<compile_context>
chip_gen: v6e
topology: v6e:2x2x1
jax: 0.10.0
libtpu: 0.0.40
codegen_flags: <defaults>
</compile_context>

<pallas_src>
import functools

import jax
import jax.numpy as jnp
from jax.experimental import pallas as pl
from jax.experimental.pallas import tpu as pltpu


def _round_up(n, m):
    return ((n + m - 1) // m) * m


def _device_kind():
    try:
        return jax.devices()[0].device_kind.lower()
    except Exception:
        return ""


@functools.lru_cache(maxsize=None)
def _bf16_elementwise_default():
    # v5e and older have no bf16 VPU path -> keep f32 elementwise there.
    kind = _device_kind()
    return not any(tag in kind for tag in ("v2", "v3", "v4", "v5"))


@functools.lru_cache(maxsize=None)
def _two_core_split_default():
    # v7x has 2 TensorCores per chip; split mid-size batches so megacore uses both.
    return "v7" in _device_kind()


def _actor_kernel(x_ref, w1_ref, b1_ref, w2_ref, b2_ref, w3_ref, b3_ref, o_ref,
                  *, bf16_elementwise):
    """Fused 3-layer MLP forward for one batch tile; everything stays resident in VMEM."""
    x = x_ref[...].astype(jnp.bfloat16)

    def hidden_layer(h, w_ref, b_ref):
        acc = jnp.dot(h, w_ref[...], preferred_element_type=jnp.float32)  # MXU, f32 acc
        if bf16_elementwise:
            # v6e/v7x: bf16 VALU packs 2 elems/lane -> half the VPU work, no extra cast.
            return jnp.maximum(acc.astype(jnp.bfloat16) + b_ref[...].astype(jnp.bfloat16), 0.0)
        # v5e: keep elementwise math in f32, single cast for the next MXU input.
        return jnp.maximum(acc + b_ref[...], 0.0).astype(jnp.bfloat16)

    h1 = hidden_layer(x, w1_ref, b1_ref)
    h2 = hidden_layer(h1, w2_ref, b2_ref)
    a3 = jnp.dot(h2, w3_ref[...], preferred_element_type=jnp.float32) + b3_ref[...]
    o_ref[...] = jnp.tanh(a3).astype(o_ref.dtype)  # tanh -> EUP slot; bf16 store halves traffic


@functools.partial(
    jax.jit,
    static_argnames=("action_size", "batch_tile", "bf16_elementwise",
                     "two_core_split", "single_buffer_weights"))
def _actor_forward_impl(state, params, *, action_size, batch_tile,
                        bf16_elementwise, two_core_split, single_buffer_weights):
    w1, b1, w2, b2, w3, b3 = params
    B, S = state.shape
    H1p = w1.shape[1]   # 512
    H2p = w2.shape[1]   # 384
    Ap = w3.shape[1]    # 128

    # Batch tiling: one big tile for small B; 1024-row tiles for large B; on v7x split
    # mid-size batches into exactly 2 tiles so both TensorCores get work.
    if B <= batch_tile:
        if two_core_split and B >= 64:
            tile = _round_up(pl.cdiv(B, 2), 16)
        else:
            tile = B
    else:
        tile = batch_tile
    num_tiles = pl.cdiv(B, tile)

    def wspec(shape):
        # Weights/biases are loop-invariant (index_map constant); single-buffer them.
        if single_buffer_weights:
            return pl.BlockSpec(shape, lambda i: (0, 0), pipeline_mode=pl.Buffered(1))
        return pl.BlockSpec(shape, lambda i: (0, 0))

    in_specs = [
        pl.BlockSpec((tile, S), lambda i: (i, 0)),  # state tile (f32)
        wspec((S, H1p)),    # W1 (bf16)
        wspec((1, H1p)),    # b1 (f32)
        wspec((H1p, H2p)),  # W2 (bf16)
        wspec((1, H2p)),    # b2 (f32)
        wspec((H2p, Ap)),   # W3 (bf16)
        wspec((1, Ap)),     # b3 (f32)
    ]
    out_spec = pl.BlockSpec((tile, Ap), lambda i: (i, 0))

    kernel = functools.partial(_actor_kernel, bf16_elementwise=bf16_elementwise)

    out_padded = pl.pallas_call(
        kernel,
        out_shape=jax.ShapeDtypeStruct((B, Ap), jnp.bfloat16),
        grid_spec=pl.GridSpec(grid=(num_tiles,), in_specs=in_specs, out_specs=out_spec),
        compiler_params=pltpu.CompilerParams(
            dimension_semantics=("parallel",) if num_tiles > 1 else ("arbitrary",)),
    )(state, w1, b1, w2, b2, w3, b3)

    # Slice the lane-padded action dim back down; callers that can consume bf16 / the
    # padded slab directly should do so to avoid this extra roundtrip.
    return out_padded[:, :action_size].astype(jnp.float32)


_SINGLE_BUFFER_OK = None  # resolved lazily: does this jax accept pl.Buffered(1) specs?


def actor_forward(state, params, *, action_size, batch_tile=1024,
                  bf16_elementwise=None, two_core_split=None):
    """state: (B, state_size) f32 -> action: (B, action_size) f32."""
    global _SINGLE_BUFFER_OK
    if bf16_elementwise is None:
        bf16_elementwise = _bf16_elementwise_default()
    if two_core_split is None:
        two_core_split = _two_core_split_default()
    kwargs = dict(action_size=action_size, batch_tile=batch_tile,
                  bf16_elementwise=bool(bf16_elementwise),
                  two_core_split=bool(two_core_split))

    if _SINGLE_BUFFER_OK is None:
        try:
            out = _actor_forward_impl(state, params, single_buffer_weights=True, **kwargs)
            _SINGLE_BUFFER_OK = True
            return out
        except Exception:
            _SINGLE_BUFFER_OK = False  # fall back to default double-buffering
    return _actor_forward_impl(state, params,
                               single_buffer_weights=_SINGLE_BUFFER_OK, **kwargs)


def init_actor_params(key, state_size, action_size, fc_units=400, fc1_units=300):
    """PyTorch nn.Linear-style init U(-1/sqrt(fan_in), +1/sqrt(fan_in)), then zero-pad
    output feature dims up to multiples of 128 and cast weights to bf16 (biases f32).
    Note: state_size is intentionally NOT padded to 128 (would 8x the state DMA for
    zero MXU benefit), and hidden dims are padded minimally (400->512, 300->384)."""
    keys = jax.random.split(key, 6)
    h1p = _round_up(fc_units, 128)    # 400 -> 512
    h2p = _round_up(fc1_units, 128)   # 300 -> 384
    ap = _round_up(action_size, 128)  # 4   -> 128

    def linear(kw, kb, fan_in, fan_out, fan_in_pad, fan_out_pad):
        bound = 1.0 / jnp.sqrt(float(fan_in))
        w = jax.random.uniform(kw, (fan_in, fan_out), jnp.float32, -bound, bound)
        b = jax.random.uniform(kb, (1, fan_out), jnp.float32, -bound, bound)
        # Zero padding keeps ReLU/tanh on padded lanes exactly zero -> no contamination.
        w = jnp.pad(w, ((0, fan_in_pad - fan_in), (0, fan_out_pad - fan_out)))
        b = jnp.pad(b, ((0, 0), (0, fan_out_pad - fan_out)))
        return w.astype(jnp.bfloat16), b

    w1, b1 = linear(keys[0], keys[1], state_size, fc_units, state_size, h1p)
    w2, b2 = linear(keys[2], keys[3], fc_units, fc1_units, h1p, h2p)
    w3, b3 = linear(keys[4], keys[5], fc1_units, action_size, h2p, ap)
    return (w1, b1, w2, b2, w3, b3)


def actor_forward_ref(state, params, action_size, bf16_elementwise):
    """Pure-JAX reference doing the same bf16-matmul / f32-accum math on padded params."""
    w1, b1, w2, b2, w3, b3 = params

    def hidden_layer(h, w, b):
        acc = jnp.dot(h.astype(jnp.bfloat16), w, preferred_element_type=jnp.float32)
        if bf16_elementwise:
            return jnp.maximum(acc.astype(jnp.bfloat16) + b.astype(jnp.bfloat16), 0.0)
        return jnp.maximum(acc + b, 0.0).astype(jnp.bfloat16)

    h1 = hidden_layer(state, w1, b1)
    h2 = hidden_layer(h1, w2, b2)
    out = jnp.tanh(jnp.dot(h2.astype(jnp.bfloat16), w3,
                           preferred_element_type=jnp.float32) + b3)
    out = out.astype(jnp.bfloat16).astype(jnp.float32)   # mirror kernel's bf16 store
    return out[:, :action_size]


if __name__ == "__main__":
    key = jax.random.PRNGKey(0)
    k_params, k_state, k_state2 = jax.random.split(key, 3)

    state_size = 16
    action_size = 4
    params = init_actor_params(k_params, state_size, action_size)
    bf16_ew = _bf16_elementwise_default()

    # Small batch: single grid step.
    batch = 16
    state = jax.random.normal(k_state, (batch, state_size), dtype=jnp.float32)
    action = jax.block_until_ready(actor_forward(state, params, action_size=action_size))
    ref = actor_forward_ref(state, params, action_size, bf16_ew)
    assert action.shape == (batch, action_size)
    assert action.dtype == jnp.float32
    assert jnp.allclose(action, ref, atol=2e-2, rtol=2e-2), "mismatch vs JAX reference (B=16)"

    # Multi-tile path (forced small batch_tile) to exercise grid tiling + masked edge tile.
    batch2 = 40
    state2 = jax.random.normal(k_state2, (batch2, state_size), dtype=jnp.float32)
    action2 = jax.block_until_ready(
        actor_forward(state2, params, action_size=action_size, batch_tile=16))
    ref2 = actor_forward_ref(state2, params, action_size, bf16_ew)
    assert action2.shape == (batch2, action_size)
    assert jnp.allclose(action2, ref2, atol=2e-2, rtol=2e-2), "mismatch vs JAX reference (B=40)"

    print("KERNEL_OK")
</pallas_src>

<mosaic_0001>
module attributes {stable_mosaic.version = 11 : i64} {
  func.func @_actor_kernel(%arg0: i32, %arg1: memref<16x16xf32, #tpu.memory_space<vmem>>, %arg2: memref<16x512xbf16, #tpu.memory_space<vmem>>, %arg3: memref<1x512xf32, #tpu.memory_space<vmem>>, %arg4: memref<512x384xbf16, #tpu.memory_space<vmem>>, %arg5: memref<1x384xf32, #tpu.memory_space<vmem>>, %arg6: memref<384x128xbf16, #tpu.memory_space<vmem>>, %arg7: memref<1x128xf32, #tpu.memory_space<vmem>>, %arg8: memref<16x128xbf16, #tpu.memory_space<vmem>>) attributes {dimension_semantics = [#tpu.dimension_semantics<arbitrary>], iteration_bounds = array<i64: 1>, scalar_prefetch = 0 : i64, scratch_operands = 0 : i64, tpu.core_type = #tpu.core_type<tc>, window_params = [{transform_indices = @transform_0, window_bounds = array<i64: 16, 16>}, {pipeline_mode = #tpu.pipeline_mode<synchronous>, transform_indices = @transform_1, window_bounds = array<i64: 16, 512>}, {pipeline_mode = #tpu.pipeline_mode<synchronous>, transform_indices = @transform_2, window_bounds = array<i64: 1, 512>}, {pipeline_mode = #tpu.pipeline_mode<synchronous>, transform_indices = @transform_3, window_bounds = array<i64: 512, 384>}, {pipeline_mode = #tpu.pipeline_mode<synchronous>, transform_indices = @transform_4, window_bounds = array<i64: 1, 384>}, {pipeline_mode = #tpu.pipeline_mode<synchronous>, transform_indices = @transform_5, window_bounds = array<i64: 384, 128>}, {pipeline_mode = #tpu.pipeline_mode<synchronous>, transform_indices = @transform_6, window_bounds = array<i64: 1, 128>}, {transform_indices = @transform_7, window_bounds = array<i64: 16, 128>}]} {
    %c0 = arith.constant 0 : index
    %c0_0 = arith.constant 0 : index
    %0 = vector.load %arg1[%c0, %c0_0] : memref<16x16xf32, #tpu.memory_space<vmem>>, vector<16x16xf32>
    %1 = arith.truncf %0 : vector<16x16xf32> to vector<16x16xbf16>
    %c0_1 = arith.constant 0 : index
    %c0_2 = arith.constant 0 : index
    %2 = vector.load %arg2[%c0_1, %c0_2] : memref<16x512xbf16, #tpu.memory_space<vmem>>, vector<16x512xbf16>
    %cst = arith.constant dense<0.000000e+00> : vector<16x512xf32>
    %3 = tpu.matmul %1, %2, %cst {dimension_numbers = #tpu.dot_dimension_numbers<[1], [0], [0], [1], [0, 0, 1, 1], [], []>} : vector<16x16xbf16>, vector<16x512xbf16>, vector<16x512xf32> -> vector<16x512xf32>
    %4 = arith.truncf %3 : vector<16x512xf32> to vector<16x512xbf16>
    %c0_3 = arith.constant 0 : index
    %c0_4 = arith.constant 0 : index
    %5 = vector.load %arg3[%c0_3, %c0_4] : memref<1x512xf32, #tpu.memory_space<vmem>>, vector<1x512xf32>
    %6 = arith.truncf %5 : vector<1x512xf32> to vector<1x512xbf16>
    %7 = vector.broadcast %6 : vector<1x512xbf16> to vector<16x512xbf16>
    %8 = arith.addf %4, %7 : vector<16x512xbf16>
    %cst_5 = arith.constant 0.000000e+00 : bf16
    %9 = vector.broadcast %cst_5 : bf16 to vector<16x512xbf16>
    %10 = arith.maximumf %8, %9 : vector<16x512xbf16>
    %c0_6 = arith.constant 0 : index
    %c0_7 = arith.constant 0 : index
    %11 = vector.load %arg4[%c0_6, %c0_7] : memref<512x384xbf16, #tpu.memory_space<vmem>>, vector<512x384xbf16>
    %cst_8 = arith.constant dense<0.000000e+00> : vector<16x384xf32>
    %12 = tpu.matmul %10, %11, %cst_8 {dimension_numbers = #tpu.dot_dimension_numbers<[1], [0], [0], [1], [0, 0, 1, 1], [], []>} : vector<16x512xbf16>, vector<512x384xbf16>, vector<16x384xf32> -> vector<16x384xf32>
    %13 = arith.truncf %12 : vector<16x384xf32> to vector<16x384xbf16>
    %c0_9 = arith.constant 0 : index
    %c0_10 = arith.constant 0 : index
    %14 = vector.load %arg5[%c0_9, %c0_10] : memref<1x384xf32, #tpu.memory_space<vmem>>, vector<1x384xf32>
    %15 = arith.truncf %14 : vector<1x384xf32> to vector<1x384xbf16>
    %16 = vector.broadcast %15 : vector<1x384xbf16> to vector<16x384xbf16>
    %17 = arith.addf %13, %16 : vector<16x384xbf16>
    %cst_11 = arith.constant 0.000000e+00 : bf16
    %18 = vector.broadcast %cst_11 : bf16 to vector<16x384xbf16>
    %19 = arith.maximumf %17, %18 : vector<16x384xbf16>
    %c0_12 = arith.constant 0 : index
    %c0_13 = arith.constant 0 : index
    %20 = vector.load %arg6[%c0_12, %c0_13] : memref<384x128xbf16, #tpu.memory_space<vmem>>, vector<384x128xbf16>
    %cst_14 = arith.constant dense<0.000000e+00> : vector<16x128xf32>
    %21 = tpu.matmul %19, %20, %cst_14 {dimension_numbers = #tpu.dot_dimension_numbers<[1], [0], [0], [1], [0, 0, 1, 1], [], []>} : vector<16x384xbf16>, vector<384x128xbf16>, vector<16x128xf32> -> vector<16x128xf32>
    %c0_15 = arith.constant 0 : index
    %c0_16 = arith.constant 0 : index
    %22 = vector.load %arg7[%c0_15, %c0_16] : memref<1x128xf32, #tpu.memory_space<vmem>>, vector<1x128xf32>
    %23 = vector.broadcast %22 : vector<1x128xf32> to vector<16x128xf32>
    %24 = arith.addf %21, %23 : vector<16x128xf32>
    %25 = math.tanh %24 : vector<16x128xf32>
    %26 = arith.truncf %25 : vector<16x128xf32> to vector<16x128xbf16>
    %c0_17 = arith.constant 0 : index
    %c0_18 = arith.constant 0 : index
    %27 = vector.load %arg8[%c0_17, %c0_18] : memref<16x128xbf16, #tpu.memory_space<vmem>>, vector<16x128xbf16>
    tpu.vector_store %arg8[%c0_17, %c0_18], %26 {strides = array<i32>} : memref<16x128xbf16, #tpu.memory_space<vmem>>, vector<16x128xbf16>,
    return
  }
  func.func @transform_0(%arg0: i32) -> (i32, i32) {
    %c0_i32 = arith.constant 0 : i32
    %c0_i32_0 = arith.constant 0 : i32
    return %arg0, %c0_i32 : i32, i32
  }
  func.func @transform_1(%arg0: i32) -> (i32, i32) {
    %c0_i32 = arith.constant 0 : i32
    %c0_i32_0 = arith.constant 0 : i32
    %c0_i32_1 = arith.constant 0 : i32
    return %c0_i32, %c0_i32_0 : i32, i32
  }
  func.func @transform_2(%arg0: i32) -> (i32, i32) {
    %c0_i32 = arith.constant 0 : i32
    %c0_i32_0 = arith.constant 0 : i32
    %c0_i32_1 = arith.constant 0 : i32
    return %c0_i32, %c0_i32_0 : i32, i32
  }
  func.func @transform_3(%arg0: i32) -> (i32, i32) {
    %c0_i32 = arith.constant 0 : i32
    %c0_i32_0 = arith.constant 0 : i32
    %c0_i32_1 = arith.constant 0 : i32
    return %c0_i32, %c0_i32_0 : i32, i32
  }
  func.func @transform_4(%arg0: i32) -> (i32, i32) {
    %c0_i32 = arith.constant 0 : i32
    %c0_i32_0 = arith.constant 0 : i32
    %c0_i32_1 = arith.constant 0 : i32
    return %c0_i32, %c0_i32_0 : i32, i32
  }
  func.func @transform_5(%arg0: i32) -> (i32, i32) {
    %c0_i32 = arith.constant 0 : i32
    %c0_i32_0 = arith.constant 0 : i32
    %c0_i32_1 = arith.constant 0 : i32
    return %c0_i32, %c0_i32_0 : i32, i32
  }
  func.func @transform_6(%arg0: i32) -> (i32, i32) {
    %c0_i32 = arith.constant 0 : i32
    %c0_i32_0 = arith.constant 0 : i32
    %c0_i32_1 = arith.constant 0 : i32
    return %c0_i32, %c0_i32_0 : i32, i32
  }
  func.func @transform_7(%arg0: i32) -> (i32, i32) {
    %c0_i32 = arith.constant 0 : i32
    %c0_i32_0 = arith.constant 0 : i32
    return %arg0, %c0_i32 : i32, i32
  }
}

module attributes {stable_mosaic.version = 11 : i64} {
  func.func @_actor_kernel(%arg0: i32, %arg1: memref<16x16xf32, #tpu.memory_space<vmem>>, %arg2: memref<16x512xbf16, #tpu.memory_space<vmem>>, %arg3: memref<1x512xf32, #tpu.memory_space<vmem>>, %arg4: memref<512x384xbf16, #tpu.memory_space<vmem>>, %arg5: memref<1x384xf32, #tpu.memory_space<vmem>>, %arg6: memref<384x128xbf16, #tpu.memory_space<vmem>>, %arg7: memref<1x128xf32, #tpu.memory_space<vmem>>, %arg8: memref<16x128xbf16, #tpu.memory_space<vmem>>) attributes {dimension_semantics = [#tpu.dimension_semantics<arbitrary>], iteration_bounds = array<i64: 1>, scalar_prefetch = 0 : i64, scratch_operands = 0 : i64, tpu.core_type = #tpu.core_type<tc>, window_params = [{transform_indices = @transform_0, window_bounds = array<i64: 16, 16>}, {pipeline_mode = #tpu.pipeline_mode<synchronous>, transform_indices = @transform_1, window_bounds = array<i64: 16, 512>}, {pipeline_mode = #tpu.pipeline_mode<synchronous>, transform_indices = @transform_2, window_bounds = array<i64: 1, 512>}, {pipeline_mode = #tpu.pipeline_mode<synchronous>, transform_indices = @transform_3, window_bounds = array<i64: 512, 384>}, {pipeline_mode = #tpu.pipeline_mode<synchronous>, transform_indices = @transform_4, window_bounds = array<i64: 1, 384>}, {pipeline_mode = #tpu.pipeline_mode<synchronous>, transform_indices = @transform_5, window_bounds = array<i64: 384, 128>}, {pipeline_mode = #tpu.pipeline_mode<synchronous>, transform_indices = @transform_6, window_bounds = array<i64: 1, 128>}, {transform_indices = @transform_7, window_bounds = array<i64: 16, 128>}]} {
    %c0 = arith.constant 0 : index
    %c0_0 = arith.constant 0 : index
    %0 = vector.load %arg1[%c0, %c0_0] : memref<16x16xf32, #tpu.memory_space<vmem>>, vector<16x16xf32>
    %1 = arith.truncf %0 : vector<16x16xf32> to vector<16x16xbf16>
    %c0_1 = arith.constant 0 : index
    %c0_2 = arith.constant 0 : index
    %2 = vector.load %arg2[%c0_1, %c0_2] : memref<16x512xbf16, #tpu.memory_space<vmem>>, vector<16x512xbf16>
    %cst = arith.constant dense<0.000000e+00> : vector<16x512xf32>
    %3 = tpu.matmul %1, %2, %cst {dimension_numbers = #tpu.dot_dimension_numbers<[1], [0], [0], [1], [0, 0, 1, 1], [], []>} : vector<16x16xbf16>, vector<16x512xbf16>, vector<16x512xf32> -> vector<16x512xf32>
    %4 = arith.truncf %3 : vector<16x512xf32> to vector<16x512xbf16>
    %c0_3 = arith.constant 0 : index
    %c0_4 = arith.constant 0 : index
    %5 = vector.load %arg3[%c0_3, %c0_4] : memref<1x512xf32, #tpu.memory_space<vmem>>, vector<1x512xf32>
    %6 = arith.truncf %5 : vector<1x512xf32> to vector<1x512xbf16>
    %7 = vector.broadcast %6 : vector<1x512xbf16> to vector<16x512xbf16>
    %8 = arith.addf %4, %7 : vector<16x512xbf16>
    %cst_5 = arith.constant 0.000000e+00 : bf16
    %9 = vector.broadcast %cst_5 : bf16 to vector<16x512xbf16>
    %10 = arith.maximumf %8, %9 : vector<16x512xbf16>
    %c0_6 = arith.constant 0 : index
    %c0_7 = arith.constant 0 : index
    %11 = vector.load %arg4[%c0_6, %c0_7] : memref<512x384xbf16, #tpu.memory_space<vmem>>, vector<512x384xbf16>
    %cst_8 = arith.constant dense<0.000000e+00> : vector<16x384xf32>
    %12 = tpu.matmul %10, %11, %cst_8 {dimension_numbers = #tpu.dot_dimension_numbers<[1], [0], [0], [1], [0, 0, 1, 1], [], []>} : vector<16x512xbf16>, vector<512x384xbf16>, vector<16x384xf32> -> vector<16x384xf32>
    %13 = arith.truncf %12 : vector<16x384xf32> to vector<16x384xbf16>
    %c0_9 = arith.constant 0 : index
    %c0_10 = arith.constant 0 : index
    %14 = vector.load %arg5[%c0_9, %c0_10] : memref<1x384xf32, #tpu.memory_space<vmem>>, vector<1x384xf32>
    %15 = arith.truncf %14 : vector<1x384xf32> to vector<1x384xbf16>
    %16 = vector.broadcast %15 : vector<1x384xbf16> to vector<16x384xbf16>
    %17 = arith.addf %13, %16 : vector<16x384xbf16>
    %cst_11 = arith.constant 0.000000e+00 : bf16
    %18 = vector.broadcast %cst_11 : bf16 to vector<16x384xbf16>
    %19 = arith.maximumf %17, %18 : vector<16x384xbf16>
    %c0_12 = arith.constant 0 : index
    %c0_13 = arith.constant 0 : index
    %20 = vector.load %arg6[%c0_12, %c0_13] : memref<384x128xbf16, #tpu.memory_space<vmem>>, vector<384x128xbf16>
    %cst_14 = arith.constant dense<0.000000e+00> : vector<16x128xf32>
    %21 = tpu.matmul %19, %20, %cst_14 {dimension_numbers = #tpu.dot_dimension_numbers<[1], [0], [0], [1], [0, 0, 1, 1], [], []>} : vector<16x384xbf16>, vector<384x128xbf16>, vector<16x128xf32> -> vector<16x128xf32>
    %c0_15 = arith.constant 0 : index
    %c0_16 = arith.constant 0 : index
    %22 = vector.load %arg7[%c0_15, %c0_16] : memref<1x128xf32, #tpu.memory_space<vmem>>, vector<1x128xf32>
    %23 = vector.broadcast %22 : vector<1x128xf32> to vector<16x128xf32>
    %24 = arith.addf %21, %23 : vector<16x128xf32>
    %25 = math.tanh %24 : vector<16x128xf32>
    %26 = arith.truncf %25 : vector<16x128xf32> to vector<16x128xbf16>
    %c0_17 = arith.constant 0 : index
    %c0_18 = arith.constant 0 : index
    %27 = vector.load %arg8[%c0_17, %c0_18] : memref<16x128xbf16, #tpu.memory_space<vmem>>, vector<16x128xbf16>
    tpu.vector_store %arg8[%c0_17, %c0_18], %26 {strides = array<i32>} : memref<16x128xbf16, #tpu.memory_space<vmem>>, vector<16x128xbf16>,
    return
  }
  func.func @transform_0(%arg0: i32) -> (i32, i32) {
    %c0_i32 = arith.constant 0 : i32
    %c0_i32_0 = arith.constant 0 : i32
    return %arg0, %c0_i32 : i32, i32
  }
  func.func @transform_1(%arg0: i32) -> (i32, i32) {
    %c0_i32 = arith.constant 0 : i32
    %c0_i32_0 = arith.constant 0 : i32
    %c0_i32_1 = arith.constant 0 : i32
    return %c0_i32, %c0_i32_0 : i32, i32
  }
  func.func @transform_2(%arg0: i32) -> (i32, i32) {
    %c0_i32 = arith.constant 0 : i32
    %c0_i32_0 = arith.constant 0 : i32
    %c0_i32_1 = arith.constant 0 : i32
    return %c0_i32, %c0_i32_0 : i32, i32
  }
  func.func @transform_3(%arg0: i32) -> (i32, i32) {
    %c0_i32 = arith.constant 0 : i32
    %c0_i32_0 = arith.constant 0 : i32
    %c0_i32_1 = arith.constant 0 : i32
    return %c0_i32, %c0_i32_0 : i32, i32
  }
  func.func @transform_4(%arg0: i32) -> (i32, i32) {
    %c0_i32 = arith.constant 0 : i32
    %c0_i32_0 = arith.constant 0 : i32
    %c0_i32_1 = arith.constant 0 : i32
    return %c0_i32, %c0_i32_0 : i32, i32
  }
  func.func @transform_5(%arg0: i32) -> (i32, i32) {
    %c0_i32 = arith.constant 0 : i32
    %c0_i32_0 = arith.constant 0 : i32
    %c0_i32_1 = arith.constant 0 : i32
    return %c0_i32, %c0_i32_0 : i32, i32
  }
  func.func @transform_6(%arg0: i32) -> (i32, i32) {
    %c0_i32 = arith.constant 0 : i32
    %c0_i32_0 = arith.constant 0 : i32
    %c0_i32_1 = arith.constant 0 : i32
    return %c0_i32, %c0_i32_0 : i32, i32
  }
  func.func @transform_7(%arg0: i32) -> (i32, i32) {
    %c0_i32 = arith.constant 0 : i32
    %c0_i32_0 = arith.constant 0 : i32
    return %arg0, %c0_i32 : i32, i32
  }
}

</mosaic_0001>

<bundles_post_ra>
// kernel: _actor_forward_impl.1
= control target key start
LH: loop header
LB: loop body
LE: loop exit
PB: predicated region body
PF: predicated region fallthrough
CT: control target
= control target key end

     0   :  { %12 = vsyncpa [#allocation3], 0  ;;  %s2071_s0 = inlined_call_operand.hbm [shape: f32[16,16], index: 0, kind: input, shape index: {}]   ;;  %s2072_s1 = inlined_call_operand.hbm [shape: bf16[16,512], index: 1, kind: input, shape index: {}]   ;;  %s2073_s2 = inlined_call_operand.hbm [shape: f32[1,512], index: 2, kind: input, shape index: {}]   ;;  %s2074_s3 = inlined_call_operand.hbm [shape: bf16[512,384], index: 3, kind: input, shape index: {}]   ;;  %s2075_s4 = inlined_call_operand.vmem [shape: f32[1,384], index: 4, kind: input, shape index: {}]   ;;  %s2076_s5 = inlined_call_operand.hbm [shape: bf16[384,128], index: 5, kind: input, shape index: {}]   ;;  %s2077_s6 = inlined_call_operand.vmem [shape: f32[1,128], index: 6, kind: input, shape index: {}]   ;;  %s2078_s7 = inlined_call_operand.vmem [shape: bf16[16,128], index: 7, kind: output, shape index: {}]  }
   0x1   :  { %13 = vsyncpa [#allocation5], 0 }
   0x2   :  { %14 = vsyncpa [#allocation8], 0  ;;  %s1949_s24 = smov [#allocation4]  }
   0x3   :  { %s32_s25 = sshll.u32 %s1949_s24, 4  ;;  %s33_s25 = int_to_ptr.vmem [resolvable:$true] %s32_s25 }
   0x4   :  { %s1851_s26 = scalar_lea.vmem %s33_s25, 512  ;;  %p1856_p1 = scmp.lt.s32.totalorder %s33_s25, %s33_s25 }
   0x5   :  { %p1852_p0 = scmp.ne.s32.totalorder %s33_s25, %s1851_s26  ;;  %p1857_p2 = scmp.lt.s32.totalorder %s1851_s26, %s1851_s26 }
   0x7   :  { %p1858_p3 = por %p1857_p2, %p1856_p1 }
   0x9   :  { %p1859_p4 = pnand %p1858_p3, %p1852_p0 }
   0xb   :  { %1862 = shalt.err (!%p1859_p4)
}
   0xc   :  { %s1950_s27 = smov 256   ;;  %s1951_s28 = smov 16  }
   0xd   :  { %38 = dma.hbm_to_vmem [thread:$0]  %s2072_s1, 512, %s33_s25, [#allocation5], %s1950_s27, %s1950_s27, %s1951_s28  }
   0xe   :  { %s1952_s8 = smov [#allocation7]  }
   0xf   :  { %s54_s9 = sshll.u32 %s1952_s8, 4  ;;  %s55_s9 = int_to_ptr.vmem [resolvable:$true] %s54_s9 }
  0x10   :  { %s1871_s10 = scalar_lea.vmem %s55_s9, 12288  ;;  %p1876_p6 = scmp.lt.s32.totalorder %s55_s9, %s55_s9 }
  0x11   :  { %p1872_p5 = scmp.ne.s32.totalorder %s55_s9, %s1871_s10  ;;  %p1877_p7 = scmp.lt.s32.totalorder %s1871_s10, %s1871_s10 }
  0x13   :  { %p1878_p8 = por %p1877_p7, %p1876_p6 }
  0x15   :  { %p1879_p9 = pnand %p1878_p8, %p1872_p5 }
  0x17   :  { %1882 = shalt.err (!%p1879_p9)
}
  0x18   :  { %s1953_s11 = smov 192   ;;  %s1954_s12 = smov 12  }
  0x19   :  { %60 = dma.hbm_to_vmem [thread:$0]  %s2074_s3, 12288, %s55_s9, [#allocation8], %s1953_s11, %s1953_s11, %s1954_s12  }
  0x1a   :  { %s1955_s15 = smov [#allocation2]  }
  0x1b   :  { %s20_s16 = sshll.u32 %s1955_s15, 4  ;;  %s21_s16 = int_to_ptr.vmem [resolvable:$true] %s20_s16 }
  0x1c   :  { %s1891_s1 = scalar_lea.vmem %s21_s16, 256  ;;  %p1896_p11 = scmp.lt.s32.totalorder %s21_s16, %s21_s16 }
  0x1d   :  { %p1892_p10 = scmp.ne.s32.totalorder %s21_s16, %s1891_s1  ;;  %p1897_p12 = scmp.lt.s32.totalorder %s1891_s1, %s1891_s1 }
  0x1f   :  { %p1898_p13 = por %p1897_p12, %p1896_p11 }
  0x21   :  { %p1899_p0 = pnand %p1898_p13, %p1892_p10 }
  0x23   :  { %1902 = shalt.err (!%p1899_p0)
}
  0x24   :  { %s1956_s17 = smov 128   ;;  %s1957_s18 = smov 8  }
  0x25   :  { %26 = dma.hbm_to_vmem [thread:$0]  %s2071_s0, 256, %s21_s16, [#allocation3], %s1956_s17, %s1956_s17, %s1957_s18  }
  0x26   :  { %s1958_s21 = smov [#allocation6]   ;;  %s1959_s3 = smov [#allocation9]  }
  0x27   :  { %s45_s22 = sshll.u32 %s1958_s21, 4  ;;  %s68_s23 = sshll.u32 %s1959_s3, 4  ;;  %s46_s22 = int_to_ptr.vmem [resolvable:$true] %s45_s22  ;;  %s69_s23 = int_to_ptr.vmem [resolvable:$true] %s68_s23 }
  0x28   :  { %s1911_s24 = scalar_lea.vmem %s46_s22, 64  ;;  %p1916_p2 = scmp.lt.s32.totalorder %s46_s22, %s46_s22 }
  0x29   :  { %p1912_p1 = scmp.ne.s32.totalorder %s46_s22, %s1911_s24  ;;  %p1917_p3 = scmp.lt.s32.totalorder %s1911_s24, %s1911_s24 }
  0x2b   :  { %p1918_p4 = por %p1917_p3, %p1916_p2 }
  0x2d   :  { %p1919_p5 = pnand %p1918_p4, %p1912_p1 }
  0x2f   :  { %1922 = shalt.err (!%p1919_p5)
}
  0x30   :  { %48 = dma.hbm_to_vmem [thread:$0]  %s2073_s2, 64, %s46_s22, [#allocation5]  }
  0x31   :  { %s1931_s27 = scalar_lea.vmem %s69_s23, 3072  ;;  %p1936_p7 = scmp.lt.s32.totalorder %s69_s23, %s69_s23 }
  0x32   :  { %p1932_p6 = scmp.ne.s32.totalorder %s69_s23, %s1931_s27  ;;  %p1937_p8 = scmp.lt.s32.totalorder %s1931_s27, %s1931_s27 }
  0x34   :  { %p1938_p9 = por %p1937_p8, %p1936_p7 }
  0x36   :  { %p1939_p10 = pnand %p1938_p9, %p1932_p6 }
  0x38   :  { %1942 = shalt.err (!%p1939_p10)
}
  0x39   :  { %s1960_s0 = smov 64   ;;  %s1961_s28 = smov 4  }
  0x3a   :  { %74 = dma.hbm_to_vmem [thread:$0]  %s2076_s5, 3072, %s69_s23, [#allocation8], %s1960_s0, %s1960_s0, %s1961_s28  }
  0x3b   :  { %1943 = dma.done.wait [#allocation3], 256  }
  0x3c   :  { %1944 = vsyncadd [#allocation3], 4294967040 }
  0x3d   :  { %1945 = dma.done.wait [#allocation5], 576  }
  0x3e   :  { %1946 = vsyncadd [#allocation5], 4294966720 }
  0x3f   :  { %1947 = dma.done.wait [#allocation8], 15360  }
  0x40   :  { %1948 = vsyncadd [#allocation8], 4294951936  ;;  %v1962_v0 = vmov 0   ;;  %v1681_v1 = vld [vmem:[#allocation4 + $0x4] ss:$16 sps:$4 sm:$0xff]   ;;  %v94_v6 = vld [vmem:[#allocation2 + $0x8] sm:$0xff] }
  0x41   :  { %156 = vmatprep.mubr.bf16.mxu0 %v1962_v0  ;;  %199 = vmatprep.mubr.bf16.mxu1 %v1962_v0  ;;  %v1683_v2 = vld [vmem:[#allocation4 + $0xc] ss:$16 sps:$4 sm:$0xff]   ;;  %v1685_v3 = vld [vmem:[#allocation4] ss:$16 sps:$4 sm:$0xff]   ;;  %v1686_v4 = vld [vmem:[#allocation4 + $0x8] ss:$16 sps:$4 sm:$0xff]  }
  0x42   :  { %138 = vmatprep.subr.bf16.mxu0 %v1681_v1  ;;  %v93_v5 = vld [vmem:[#allocation2] sm:$0xff]  ;;  %181 = vmatprep.subr.bf16.mxu1 %v1683_v2  ;;  %vm120_vm0 = vcmask 130048   ;;  %v1687_v8 = vld [vmem:[#allocation7 + $0xa8] ss:$12 sps:$4 sm:$0xff]   ;;  %v1699_v18 = vld [vmem:[#allocation7 + $0x78] ss:$12 sps:$4 sm:$0xff]  }
  0x43   :  { %139 = vmatpush1.bf16.msra.mxu0 %v1685_v3  ;;  %182 = vmatpush1.bf16.msra.mxu1 %v1686_v4  ;;  %v95_v7 = vpack.c.bf16 %v94_v6, %v93_v5  ;;  %v1689_v9 = vld [vmem:[#allocation7 + $0xac] ss:$12 sps:$4 sm:$0xff]   ;;  %v1690_v10 = vld [vmem:[#allocation7 + $0x228] ss:$12 sps:$4 sm:$0xff]   ;;  %v1693_v13 = vld [vmem:[#allocation7 + $0x90] ss:$12 sps:$4 sm:$0xff]  }
  0x44   :  { %v1692_v11 = vld [vmem:[#allocation7 + $0x22c] ss:$12 sps:$4 sm:$0xff]   ;;  %916 = vmatprep.subr.bf16.mxu0 %v1689_v9  ;;  %v1695_v12 = vld [vmem:[#allocation7 + $0x94] ss:$12 sps:$4 sm:$0xff]   ;;  %v1696_v15 = vld [vmem:[#allocation7 + $0x210] ss:$12 sps:$4 sm:$0xff]  }
  0x45   :  { %959 = vmatprep.subr.bf16.mxu1 %v1692_v11  ;;  %v1698_v14 = vld [vmem:[#allocation7 + $0x214] ss:$12 sps:$4 sm:$0xff]   ;;  %v1701_v16 = vld [vmem:[#allocation7 + $0x7c] ss:$12 sps:$4 sm:$0xff]   ;;  %v1702_v19 = vld [vmem:[#allocation7 + $0x1f8] ss:$12 sps:$4 sm:$0xff]   ;;  %v216_v11 = vlaneseq }
  0x46   :  { %1438 = vmatmul.mubr.msk.bf16.vlgmr.msra.gmra.mxu0 %vm120_vm0, %v95_v7  ;;  %1439 = vmatmul.mubr.msk.bf16.vlgmr.msra.gmra.mxu1 %vm120_vm0, %v95_v7  ;;  %v1704_v17 = vld [vmem:[#allocation7 + $0x1fc] ss:$12 sps:$4 sm:$0xff]   ;;  %v1707_v20 = vld [vmem:[#allocation7 + $0x64] ss:$12 sps:$4 sm:$0xff]   ;;  %v1705_v22 = vld [vmem:[#allocation7 + $0x60] ss:$12 sps:$4 sm:$0xff]  }
  0x47   :  { %917 = vmatpush1.bf16.msra.mxu0 %v1687_v8  ;;  %960 = vmatpush1.bf16.msra.mxu1 %v1690_v10  ;;  %v1710_v21 = vld [vmem:[#allocation7 + $0x1e4] ss:$12 sps:$4 sm:$0xff]   ;;  %v1708_v23 = vld [vmem:[#allocation7 + $0x1e0] ss:$12 sps:$4 sm:$0xff]   ;;  %v1711_v26 = vld [vmem:[#allocation7 + $0x48] ss:$12 sps:$4 sm:$0xff]  }
  0x48   :  { %918 = vmatprep.subr.bf16.mxu0 %v1695_v12  ;;  %961 = vmatprep.subr.bf16.mxu1 %v1698_v14  ;;  %v1713_v24 = vld [vmem:[#allocation7 + $0x4c] ss:$12 sps:$4 sm:$0xff]   ;;  %v1714_v27 = vld [vmem:[#allocation7 + $0x1c8] ss:$12 sps:$4 sm:$0xff]   ;;  %v1717_v30 = vld [vmem:[#allocation7 + $0x30] ss:$12 sps:$4 sm:$0xff]  }
  0x49   :  { %v1716_v25 = vld [vmem:[#allocation7 + $0x1cc] ss:$12 sps:$4 sm:$0xff]   ;;  %v1719_v28 = vld [vmem:[#allocation7 + $0x34] ss:$12 sps:$4 sm:$0xff]   ;;  %v1720_v31 = vld [vmem:[#allocation7 + $0x1b0] ss:$12 sps:$4 sm:$0xff]  }
  0x4a   :  { %v1722_v29 = vld [vmem:[#allocation7 + $0x1b4] ss:$12 sps:$4 sm:$0xff]   ;;  %v1725_v32 = vld [vmem:[#allocation7 + $0x1c] ss:$12 sps:$4 sm:$0xff]   ;;  %v1723_v34 = vld [vmem:[#allocation7 + $0x18] ss:$12 sps:$4 sm:$0xff]  }
  0x4b   :  { %919 = vmatpush1.bf16.msra.mxu0 %v1693_v13  ;;  %962 = vmatpush1.bf16.msra.mxu1 %v1696_v15  ;;  %v1728_v33 = vld [vmem:[#allocation7 + $0x19c] ss:$12 sps:$4 sm:$0xff]   ;;  %v1726_v35 = vld [vmem:[#allocation7 + $0x198] ss:$12 sps:$4 sm:$0xff]   ;;  %v1729_v38 = vld [vmem:[#allocation7] ss:$12 sps:$4 sm:$0xff]  }
  0x4c   :  { %920 = vmatprep.subr.bf16.mxu0 %v1701_v16  ;;  %963 = vmatprep.subr.bf16.mxu1 %v1704_v17  ;;  %v1731_v36 = vld [vmem:[#allocation7 + $0x4] ss:$12 sps:$4 sm:$0xff]   ;;  %v1732_v39 = vld [vmem:[#allocation7 + $0x180] ss:$12 sps:$4 sm:$0xff]   ;;  %v1735_v42 = vld [vmem:[#allocation7 + $0x168] ss:$12 sps:$4 sm:$0xff]  }
  0x4d   :  { %v1734_v37 = vld [vmem:[#allocation7 + $0x184] ss:$12 sps:$4 sm:$0xff]   ;;  %v1737_v40 = vld [vmem:[#allocation7 + $0x16c] ss:$12 sps:$4 sm:$0xff]   ;;  %v1738_v43 = vld [vmem:[#allocation7 + $0x2e8] ss:$12 sps:$4 sm:$0xff]  }
  0x4e   :  { %v1740_v41 = vld [vmem:[#allocation7 + $0x2ec] ss:$12 sps:$4 sm:$0xff]   ;;  %v1743_v44 = vld [vmem:[#allocation7 + $0x154] ss:$12 sps:$4 sm:$0xff]   ;;  %v1741_v46 = vld [vmem:[#allocation7 + $0x150] ss:$12 sps:$4 sm:$0xff]  }
  0x4f   :  { %921 = vmatpush1.bf16.msra.mxu0 %v1699_v18  ;;  %964 = vmatpush1.bf16.msra.mxu1 %v1702_v19  ;;  %v1746_v45 = vld [vmem:[#allocation7 + $0x2d4] ss:$12 sps:$4 sm:$0xff]   ;;  %v1744_v47 = vld [vmem:[#allocation7 + $0x2d0] ss:$12 sps:$4 sm:$0xff]   ;;  %v1747_v50 = vld [vmem:[#allocation7 + $0x138] ss:$12 sps:$4 sm:$0xff]  }
  0x50   :  { %922 = vmatprep.subr.bf16.mxu0 %v1707_v20  ;;  %965 = vmatprep.subr.bf16.mxu1 %v1710_v21  ;;  %v1749_v48 = vld [vmem:[#allocation7 + $0x13c] ss:$12 sps:$4 sm:$0xff]   ;;  %v1750_v51 = vld [vmem:[#allocation7 + $0x2b8] ss:$12 sps:$4 sm:$0xff]   ;;  %v1753_v54 = vld [vmem:[#allocation7 + $0x120] ss:$12 sps:$4 sm:$0xff]  }
  0x51   :  { %v1752_v49 = vld [vmem:[#allocation7 + $0x2bc] ss:$12 sps:$4 sm:$0xff]   ;;  %v1755_v52 = vld [vmem:[#allocation7 + $0x124] ss:$12 sps:$4 sm:$0xff]   ;;  %v1756_v55 = vld [vmem:[#allocation7 + $0x2a0] ss:$12 sps:$4 sm:$0xff]  }
  0x52   :  { %v1758_v53 = vld [vmem:[#allocation7 + $0x2a4] ss:$12 sps:$4 sm:$0xff]   ;;  %v1761_v56 = vld [vmem:[#allocation7 + $0x10c] ss:$12 sps:$4 sm:$0xff]   ;;  %v1759_v58 = vld [vmem:[#allocation7 + $0x108] ss:$12 sps:$4 sm:$0xff]  }
  0x53   :  { %923 = vmatpush1.bf16.msra.mxu0 %v1705_v22  ;;  %966 = vmatpush1.bf16.msra.mxu1 %v1708_v23  ;;  %v1764_v57 = vld [vmem:[#allocation7 + $0x28c] ss:$12 sps:$4 sm:$0xff]   ;;  %v1762_v59 = vld [vmem:[#allocation7 + $0x288] ss:$12 sps:$4 sm:$0xff]   ;;  %v1765_v62 = vld [vmem:[#allocation7 + $0xf0] ss:$12 sps:$4 sm:$0xff]  }
  0x54   :  { %924 = vmatprep.subr.bf16.mxu0 %v1713_v24  ;;  %967 = vmatprep.subr.bf16.mxu1 %v1716_v25  ;;  %v1767_v60 = vld [vmem:[#allocation7 + $0xf4] ss:$12 sps:$4 sm:$0xff]   ;;  %v1768_v63 = vld [vmem:[#allocation7 + $0x270] ss:$12 sps:$4 sm:$0xff]   ;;  %v1771_v3 = vld [vmem:[#allocation7 + $0xd8] ss:$12 sps:$4 sm:$0xff]  }
  0x55   :  { %v1770_v61 = vld [vmem:[#allocation7 + $0x274] ss:$12 sps:$4 sm:$0xff]   ;;  %v1773_v1 = vld [vmem:[#allocation7 + $0xdc] ss:$12 sps:$4 sm:$0xff]   ;;  %v1774_v4 = vld [vmem:[#allocation7 + $0x258] ss:$12 sps:$4 sm:$0xff]  }
  0x56   :  { %v1776_v2 = vld [vmem:[#allocation7 + $0x25c] ss:$12 sps:$4 sm:$0xff]   ;;  %v1779_v5 = vld [vmem:[#allocation7 + $0xc4] ss:$12 sps:$4 sm:$0xff]   ;;  %v1777_v7 = vld [vmem:[#allocation7 + $0xc0] ss:$12 sps:$4 sm:$0xff]  }
  0x57   :  { %925 = vmatpush1.bf16.msra.mxu0 %v1711_v26  ;;  %968 = vmatpush1.bf16.msra.mxu1 %v1714_v27  ;;  %v1782_v6 = vld [vmem:[#allocation7 + $0x244] ss:$12 sps:$4 sm:$0xff]   ;;  %v1780_v8 = vld [vmem:[#allocation7 + $0x240] ss:$12 sps:$4 sm:$0xff]   ;;  %v2022_v12 = vshrl.u32 %v216_v11, 7  ;;  %vm1964_vm1 = vmmov 0  }
  0x58   :  { %926 = vmatprep.subr.bf16.mxu0 %v1719_v28  ;;  %969 = vmatprep.subr.bf16.mxu1 %v1722_v29  ;;  %v1783_v9 = vld [vmem:[#allocation7 + $0x170] ss:$12 sps:$4 sm:$0xff]   ;;  %v1805_v11 = vld [vmem:[#allocation7 + $0x38] ss:$12 sps:$4 sm:$0xff]  }
  0x59   :  { %v1784_v10 = vld [vmem:[#allocation7 + $0x2f0] ss:$12 sps:$4 sm:$0xff]   ;;  %v2025_v13 = vsub.s32 0, %v2022_v12  ;;  %v226_v14 = vsub.s32 2, %v2022_v12  ;;  %v222_v16 = vsub.s32 1, %v2022_v12  ;;  %v230_v17 = vsub.s32 3, %v2022_v12 }
  0x5a   :  { %v214_v15 = vld [vmem:[#allocation6] sm:$0xf] }
  0x5b   :  { %927 = vmatpush1.bf16.msra.mxu0 %v1717_v30  ;;  %970 = vmatpush1.bf16.msra.mxu1 %v1720_v31  ;;  %v219_v18 = vrot.slane %v214_v15, %v2025_v13  ;;  %v227_v19 = vrot.slane %v214_v15, %v226_v14  ;;  %v223_v20 = vrot.slane %v214_v15, %v222_v16 }
  0x5c   :  { %928 = vmatprep.subr.bf16.mxu0 %v1725_v32  ;;  %971 = vmatprep.subr.bf16.mxu1 %v1728_v33  ;;  %v231_v21 = vrot.slane %v214_v15, %v230_v17  ;;  %v1806_v15 = vld [vmem:[#allocation7 + $0x1b8] ss:$12 sps:$4 sm:$0xff]   ;;  %v1807_v17 = vld [vmem:[#allocation7 + $0xe0] ss:$12 sps:$4 sm:$0xff]  }
  0x5d   :  { %v236_v22 = vpack.c.bf16 %v219_v18, %v219_v18  ;;  %v238_v23 = vpack.c.bf16 %v227_v19, %v227_v19  ;;  %v237_v24 = vpack.c.bf16 %v223_v20, %v223_v20  ;;  %v1808_v18 = vld [vmem:[#allocation7 + $0x260] ss:$12 sps:$4 sm:$0xff]  }
  0x5e   :  { %v239_v25 = vpack.c.bf16 %v231_v21, %v231_v21  ;;  %v1809_v19 = vld [vmem:[#allocation7 + $0x20] ss:$12 sps:$4 sm:$0xff]   ;;  %v1811_v21 = vld [vmem:[#allocation7 + $0xc8] ss:$12 sps:$4 sm:$0xff]  }
  0x5f   :  { %929 = vmatpush1.bf16.msra.mxu0 %v1723_v34  ;;  %972 = vmatpush1.bf16.msra.mxu1 %v1726_v35  ;;  %v241_v28 = vpack.i.b16 %v236_v22, %v236_v22  ;;  %v255_v29 = vpack.i.b16 %v238_v23, %v238_v23  ;;  %v248_v30 = vpack.i.b16 %v237_v24, %v237_v24  ;;  %v1810_v20 = vld [vmem:[#allocation7 + $0x1a0] ss:$12 sps:$4 sm:$0xff]   ;;  %v1812_v22 = vld [vmem:[#allocation7 + $0x248] ss:$12 sps:$4 sm:$0xff]  }
  0x60   :  { %930 = vmatprep.subr.bf16.mxu0 %v1731_v36  ;;  %973 = vmatprep.subr.bf16.mxu1 %v1734_v37  ;;  %v262_v31 = vpack.i.b16 %v239_v25, %v239_v25  ;;  %v1813_v23 = vld [vmem:[#allocation7 + $0x8] ss:$12 sps:$4 sm:$0xff]   ;;  %v1815_v25 = vld [vmem:[#allocation9 + $0x78] sm:$0xff]  }
  0x61   :  { %v246_v35 = vrot.slane %v241_v28, %v2025_v13  ;;  %v260_v37 = vrot.slane %v255_v29, %v2025_v13  ;;  %v1814_v24 = vld [vmem:[#allocation7 + $0x188] ss:$12 sps:$4 sm:$0xff]  }
  0x62   :  { %v1818_v28 = vld [vmem:[#allocation9 + $0x30] sm:$0xff]   ;;  %v1819_v29 = vld [vmem:[#allocation9 + $0x68] sm:$0xff]  }
  0x63   :  { %931 = vmatpush1.bf16.msra.mxu0 %v1729_v38  ;;  %974 = vmatpush1.bf16.msra.mxu1 %v1732_v39 }
  0x64   :  { %932 = vmatprep.subr.bf16.mxu0 %v1737_v40  ;;  %975 = vmatprep.subr.bf16.mxu1 %v1740_v41  ;;  %v253_v40 = vrot.slane %v248_v30, %v2025_v13  ;;  %v267_v41 = vrot.slane %v262_v31, %v2025_v13  ;;  %v1820_v30 = vld [vmem:[#allocation9 + $0x28] sm:$0xff]   ;;  %v1821_v31 = vld [vmem:[#allocation9 + $0x60] sm:$0xff]  }
  0x67   :  { %933 = vmatpush2.bf16.msra.mxu0 %v1735_v42  ;;  %976 = vmatpush2.bf16.msra.mxu1 %v1738_v43 }
  0x68   :  { %934 = vmatprep.subr.bf16.mxu0 %v1743_v44  ;;  %977 = vmatprep.subr.bf16.mxu1 %v1746_v45 }
  0x6b   :  { %935 = vmatpush2.bf16.msra.mxu0 %v1741_v46  ;;  %978 = vmatpush2.bf16.msra.mxu1 %v1744_v47 }
  0x6c   :  { %936 = vmatprep.subr.bf16.mxu0 %v1749_v48  ;;  %979 = vmatprep.subr.bf16.mxu1 %v1752_v49 }
  0x6f   :  { %937 = vmatpush2.bf16.msra.mxu0 %v1747_v50  ;;  %980 = vmatpush2.bf16.msra.mxu1 %v1750_v51 }
  0x70   :  { %938 = vmatprep.subr.bf16.mxu0 %v1755_v52  ;;  %981 = vmatprep.subr.bf16.mxu1 %v1758_v53  ;;  %v1785_v52 = vld [vmem:[#allocation7 + $0xb0] ss:$12 sps:$4 sm:$0xff]  }
  0x71   :  { %v1786_v53 = vld [vmem:[#allocation7 + $0x230] ss:$12 sps:$4 sm:$0xff]  }
  0x73   :  { %939 = vmatpush2.bf16.msra.mxu0 %v1753_v54  ;;  %982 = vmatpush2.bf16.msra.mxu1 %v1756_v55 }
  0x74   :  { %940 = vmatprep.subr.bf16.mxu0 %v1761_v56  ;;  %983 = vmatprep.subr.bf16.mxu1 %v1764_v57  ;;  %v1787_v56 = vld [vmem:[#allocation7 + $0x158] ss:$12 sps:$4 sm:$0xff]  }
  0x75   :  { %v1788_v57 = vld [vmem:[#allocation7 + $0x2d8] ss:$12 sps:$4 sm:$0xff]  }
  0x77   :  { %941 = vmatpush2.bf16.msra.mxu0 %v1759_v58  ;;  %984 = vmatpush2.bf16.msra.mxu1 %v1762_v59  ;;  %v1789_v58 = vld [vmem:[#allocation7 + $0x98] ss:$12 sps:$4 sm:$0xff]  }
  0x78   :  { %942 = vmatprep.subr.bf16.mxu0 %v1767_v60  ;;  %985 = vmatprep.subr.bf16.mxu1 %v1770_v61  ;;  %v1790_v59 = vld [vmem:[#allocation7 + $0x218] ss:$12 sps:$4 sm:$0xff]   ;;  %v1791_v60 = vld [vmem:[#allocation7 + $0x140] ss:$12 sps:$4 sm:$0xff]  }
  0x79   :  { %v1792_v61 = vld [vmem:[#allocation7 + $0x2c0] ss:$12 sps:$4 sm:$0xff]  }
  0x7b   :  { %943 = vmatpush2.bf16.msra.mxu0 %v1765_v62  ;;  %986 = vmatpush2.bf16.msra.mxu1 %v1768_v63  ;;  %v1793_v62 = vld [vmem:[#allocation7 + $0x80] ss:$12 sps:$4 sm:$0xff]  }
  0x7c   :  { %944 = vmatprep.subr.bf16.mxu0 %v1773_v1  ;;  %987 = vmatprep.subr.bf16.mxu1 %v1776_v2  ;;  %v1794_v63 = vld [vmem:[#allocation7 + $0x200] ss:$12 sps:$4 sm:$0xff]   ;;  %v1795_v1 = vld [vmem:[#allocation7 + $0x128] ss:$12 sps:$4 sm:$0xff]  }
  0x7d   :  { %v1796_v2 = vld [vmem:[#allocation7 + $0x2a8] ss:$12 sps:$4 sm:$0xff]  }
  0x7f   :  { %945 = vmatpush2.bf16.msra.mxu0 %v1771_v3  ;;  %988 = vmatpush2.bf16.msra.mxu1 %v1774_v4  ;;  %v1797_v3 = vld [vmem:[#allocation7 + $0x68] ss:$12 sps:$4 sm:$0xff]  }
  0x80   :  { %946 = vmatprep.subr.bf16.mxu0 %v1779_v5  ;;  %989 = vmatprep.subr.bf16.mxu1 %v1782_v6  ;;  %v1798_v4 = vld [vmem:[#allocation7 + $0x1e8] ss:$12 sps:$4 sm:$0xff]   ;;  %v1799_v5 = vld [vmem:[#allocation7 + $0x110] ss:$12 sps:$4 sm:$0xff]  }
  0x81   :  { %v1800_v6 = vld [vmem:[#allocation7 + $0x290] ss:$12 sps:$4 sm:$0xff]  }
  0x83   :  { %947 = vmatpush2.bf16.msra.mxu0 %v1777_v7  ;;  %990 = vmatpush2.bf16.msra.mxu1 %v1780_v8  ;;  %v1801_v7 = vld [vmem:[#allocation7 + $0x50] ss:$12 sps:$4 sm:$0xff]  }
  0x84   :  { %1570 = vmatprep.subr.bf16.mxu0 %v1783_v9  ;;  %1592 = vmatprep.subr.bf16.mxu1 %v1784_v10  ;;  %v1802_v8 = vld [vmem:[#allocation7 + $0x1d0] ss:$12 sps:$4 sm:$0xff]   ;;  %v1803_v9 = vld [vmem:[#allocation7 + $0xf8] ss:$12 sps:$4 sm:$0xff]  }
  0x85   :  { %v1804_v10 = vld [vmem:[#allocation7 + $0x278] ss:$12 sps:$4 sm:$0xff]  }
 0x106   :  { %v158_v26 = vpop.f32.mrf.mxu0  ;;  %v201_v27 = vpop.f32.mrf.mxu1 }
 0x108   :  { %v160_v32 = vpop.f32.mrf.mxu0  ;;  %v203_v33 = vpop.f32.mrf.mxu1 }
 0x10a   :  { %v162_v34 = vpop.f32.mrf.mxu0  ;;  %v205_v36 = vpop.f32.mrf.mxu1 }
 0x10b   :  { %v210_v38 = vpack.c.bf16 %v162_v34, %v158_v26  ;;  %v212_v39 = vpack.c.bf16 %v205_v36, %v201_v27  ;;  %v1816_v26 = vld [vmem:[#allocation9 + $0x38] sm:$0xff]   ;;  %v1817_v27 = vld [vmem:[#allocation9 + $0x70] sm:$0xff]  }
 0x10c   :  { %v164_v42 = vpop.f32.mrf.mxu0  ;;  %v207_v43 = vpop.f32.mrf.mxu1  ;;  %v1824_v34 = vld [vmem:[#allocation9 + $0x18] sm:$0xff]   ;;  %v1826_v36 = vld [vmem:[#allocation9 + $0x10] sm:$0xff]  }
 0x10d   :  { %v211_v44 = vpack.c.bf16 %v164_v42, %v160_v32  ;;  %v213_v45 = vpack.c.bf16 %v207_v43, %v203_v33  ;;  %v268_v46 = vadd.bf16 %v246_v35, %v210_v38  ;;  %v270_v47 = vadd.bf16 %v260_v37, %v212_v39  ;;  %v1822_v32 = vld [vmem:[#allocation9 + $0x20] sm:$0xff]   ;;  %v1823_v33 = vld [vmem:[#allocation9 + $0x58] sm:$0xff]   ;;  %v1825_v35 = vld [vmem:[#allocation9 + $0x50] sm:$0xff]  }
 0x10e   :  { %v1827_v37 = vld [vmem:[#allocation9 + $0x48] sm:$0xff]   ;;  %v1829_v39 = vld [vmem:[#allocation9 + $0x40] sm:$0xff]   ;;  %v1963_v42 = vmov 0.0   ;;  %v1832_v43 = vld [vmem:[#allocation9 + $0xb0] sm:$0xff]  }
 0x10f   :  { %v269_v48 = vadd.bf16 %v253_v40, %v211_v44  ;;  %v271_v49 = vadd.bf16 %v267_v41, %v213_v45  ;;  %v2042_v54 = vmax.bf16 %v1962_v0, %v268_v46  ;;  %v2045_v55 = vmax.bf16 %v1962_v0, %v270_v47  ;;  %v1828_v38 = vld [vmem:[#allocation9 + $0x8] sm:$0xff]   ;;  %v1830_v40 = vld [vmem:[#allocation9] sm:$0xff]   ;;  %v1831_v41 = vld [vmem:[#allocation9 + $0xb8] sm:$0xff]  }
 0x110   :  { %v1833_v44 = vld [vmem:[#allocation9 + $0xa8] sm:$0xff]   ;;  %v1834_v45 = vld [vmem:[#allocation9 + $0xa0] sm:$0xff]   ;;  %v1835_v46 = vld [vmem:[#allocation9 + $0x98] sm:$0xff]  }
 0x111   :  { %v273_v50 = vmax.bf16 %v1962_v0, %v269_v48  ;;  %v275_v51 = vmax.bf16 %v1962_v0, %v271_v49  ;;  %v1836_v47 = vld [vmem:[#allocation9 + $0x90] sm:$0xff]   ;;  %v1837_v48 = vld [vmem:[#allocation9 + $0x88] sm:$0xff]   ;;  %v1838_v49 = vld [vmem:[#allocation9 + $0x80] sm:$0xff]  }
 0x113   :  { %948 = vmatprep.mubr.bf16.mxu0 %v273_v50  ;;  %991 = vmatprep.mubr.bf16.mxu1 %v275_v51 }
 0x114   :  { %949 = vmatmul.mubr.bf16.vlgmr.msra.gmra.mxu0 %v2042_v54  ;;  %992 = vmatmul.mubr.bf16.vlgmr.msra.gmra.mxu1 %v2045_v55 }
 0x115   :  { %1571 = vmatpush3.bf16.msra.mxu0 %v1785_v52  ;;  %1593 = vmatpush3.bf16.msra.mxu1 %v1786_v53 }
 0x116   :  { %1034 = vmatprep.mubr.bf16.mxu0 %v273_v50  ;;  %1075 = vmatprep.mubr.bf16.mxu1 %v275_v51  ;;  %v1087_v50 = vld [vmem:[%s2075_s4] sm:$0x7] }
 0x117   :  { %1572 = vmatprep.subr.bf16.mxu0 %v1787_v56  ;;  %1594 = vmatprep.subr.bf16.mxu1 %v1788_v57  ;;  %v1092_v51 = vrot.slane %v1087_v50, %v2025_v13  ;;  %v1096_v52 = vrot.slane %v1087_v50, %v222_v16 }
 0x119   :  { %1573 = vmatpush3.bf16.msra.mxu0 %v1789_v58  ;;  %1595 = vmatpush3.bf16.msra.mxu1 %v1790_v59  ;;  %v1104_v53 = vpack.c.bf16 %v1092_v51, %v1092_v51 }
 0x11a   :  { %1574 = vmatprep.subr.bf16.mxu0 %v1791_v60  ;;  %1596 = vmatprep.subr.bf16.mxu1 %v1792_v61 }
 0x11b   :  { %v1108_v59 = vpack.i.b16 %v1104_v53, %v1104_v53 }
 0x11d   :  { %1575 = vmatpush3.bf16.msra.mxu0 %v1793_v62  ;;  %1597 = vmatpush3.bf16.msra.mxu1 %v1794_v63 }
 0x11e   :  { %1576 = vmatprep.subr.bf16.mxu0 %v1795_v1  ;;  %1598 = vmatprep.subr.bf16.mxu1 %v1796_v2  ;;  %v1113_v2 = vrot.slane %v1108_v59, %v2025_v13 }
 0x121   :  { %1577 = vmatpush3.bf16.msra.mxu0 %v1797_v3  ;;  %1599 = vmatpush3.bf16.msra.mxu1 %v1798_v4 }
 0x122   :  { %1578 = vmatprep.subr.bf16.mxu0 %v1799_v5  ;;  %1600 = vmatprep.subr.bf16.mxu1 %v1800_v6 }
 0x125   :  { %1579 = vmatpush3.bf16.msra.mxu0 %v1801_v7  ;;  %1601 = vmatpush3.bf16.msra.mxu1 %v1802_v8 }
 0x126   :  { %1580 = vmatprep.subr.bf16.mxu0 %v1803_v9  ;;  %1602 = vmatprep.subr.bf16.mxu1 %v1804_v10 }
 0x129   :  { %1581 = vmatpush3.bf16.msra.mxu0 %v1805_v11  ;;  %1603 = vmatpush3.bf16.msra.mxu1 %v1806_v15 }
 0x12a   :  { %1582 = vmatprep.subr.bf16.mxu0 %v1807_v17  ;;  %1604 = vmatprep.subr.bf16.mxu1 %v1808_v18  ;;  %v1100_v17 = vrot.slane %v1087_v50, %v226_v14 }
 0x12d   :  { %1583 = vmatpush3.bf16.msra.mxu0 %v1809_v19  ;;  %1605 = vmatpush3.bf16.msra.mxu1 %v1810_v20  ;;  %v1106_v20 = vpack.c.bf16 %v1100_v17, %v1100_v17 }
 0x12e   :  { %1584 = vmatprep.subr.bf16.mxu0 %v1811_v21  ;;  %1606 = vmatprep.subr.bf16.mxu1 %v1812_v22 }
 0x131   :  { %1585 = vmatpush3.bf16.msra.mxu0 %v1813_v23  ;;  %1607 = vmatpush3.bf16.msra.mxu1 %v1814_v24 }
 0x132   :  { %1614 = vmatprep.subr.bf16.mxu0 %v1815_v25  ;;  %1645 = vmatprep.subr.bf16.mxu1 %v1963_v42 }
 0x134   :  { %1035 = vmatmul.mubr.bf16.vlgmr.msra.gmra.mxu0 %v2042_v54  ;;  %1076 = vmatmul.mubr.bf16.vlgmr.msra.gmra.mxu1 %v2045_v55  ;;  %v1105_v54 = vpack.c.bf16 %v1096_v52, %v1096_v52 }
 0x135   :  { %1615 = vmatpush3.bf16.msra.mxu0 %v1816_v26  ;;  %1646 = vmatpush3.bf16.msra.mxu1 %v1831_v41  ;;  %v1536_v41 = vld [vmem:[%s2077_s6] ss:$0 sm:$0xff] }
 0x136   :  { %1616 = vmatprep.subr.bf16.mxu0 %v1817_v27  ;;  %1647 = vmatprep.subr.bf16.mxu1 %v1963_v42  ;;  %v1115_v60 = vpack.i.b16 %v1105_v54, %v1105_v54  ;;  %v1122_v27 = vpack.i.b16 %v1106_v20, %v1106_v20 }
 0x137   :  { %1661 = vmatprep.mubr.msk.bf16.mxu1 %vm1964_vm1, %v1963_v42 }
 0x138   :  { %v1120_v16 = vrot.slane %v1115_v60, %v2025_v13 }
 0x139   :  { %1617 = vmatpush3.bf16.msra.mxu0 %v1818_v28  ;;  %1648 = vmatpush3.bf16.msra.mxu1 %v1832_v43 }
 0x13a   :  { %1618 = vmatprep.subr.bf16.mxu0 %v1819_v29  ;;  %1649 = vmatprep.subr.bf16.mxu1 %v1963_v42 }
 0x13d   :  { %1619 = vmatpush3.bf16.msra.mxu0 %v1820_v30  ;;  %1650 = vmatpush3.bf16.msra.mxu1 %v1833_v44 }
 0x13e   :  { %1620 = vmatprep.subr.bf16.mxu0 %v1821_v31  ;;  %1651 = vmatprep.subr.bf16.mxu1 %v1963_v42 }
 0x141   :  { %1621 = vmatpush3.bf16.msra.mxu0 %v1822_v32  ;;  %1652 = vmatpush3.bf16.msra.mxu1 %v1834_v45 }
 0x142   :  { %1622 = vmatprep.subr.bf16.mxu0 %v1823_v33  ;;  %1653 = vmatprep.subr.bf16.mxu1 %v1963_v42 }
 0x145   :  { %1623 = vmatpush3.bf16.msra.mxu0 %v1824_v34  ;;  %1654 = vmatpush3.bf16.msra.mxu1 %v1835_v46  ;;  %v1127_v34 = vrot.slane %v1122_v27, %v2025_v13 }
 0x146   :  { %1624 = vmatprep.subr.bf16.mxu0 %v1825_v35  ;;  %1655 = vmatprep.subr.bf16.mxu1 %v1963_v42 }
 0x149   :  { %1625 = vmatpush3.bf16.msra.mxu0 %v1826_v36  ;;  %1656 = vmatpush3.bf16.msra.mxu1 %v1836_v47 }
 0x14a   :  { %1626 = vmatprep.subr.bf16.mxu0 %v1827_v37  ;;  %1657 = vmatprep.subr.bf16.mxu1 %v1963_v42 }
 0x14d   :  { %1627 = vmatpush3.bf16.msra.mxu0 %v1828_v38  ;;  %1658 = vmatpush3.bf16.msra.mxu1 %v1837_v48 }
 0x14e   :  { %1628 = vmatprep.subr.bf16.mxu0 %v1829_v39  ;;  %1659 = vmatprep.subr.bf16.mxu1 %v1963_v42 }
 0x151   :  { %1629 = vmatpush3.bf16.msra.mxu0 %v1830_v40  ;;  %1660 = vmatpush3.bf16.msra.mxu1 %v1838_v49 }
 0x1d4   :  { %v950_v55 = vpop.f32.mrf.mxu0  ;;  %v993_v56 = vpop.f32.mrf.mxu1 }
 0x1d5   :  { %v994_v63 = vadd.f32 %v993_v56, %v950_v55 }
 0x1d6   :  { %v952_v57 = vpop.f32.mrf.mxu0  ;;  %v995_v58 = vpop.f32.mrf.mxu1 }
 0x1d7   :  { %v996_v5 = vadd.f32 %v995_v58, %v952_v57 }
 0x1d8   :  { %v954_v61 = vpop.f32.mrf.mxu0  ;;  %v997_v62 = vpop.f32.mrf.mxu1 }
 0x1d9   :  { %v998_v1 = vadd.f32 %v997_v62, %v954_v61 }
 0x1da   :  { %v956_v3 = vpop.f32.mrf.mxu0  ;;  %v999_v4 = vpop.f32.mrf.mxu1 }
 0x1db   :  { %v1084_v6 = vpack.c.bf16 %v998_v1, %v994_v63  ;;  %v1000_v7 = vadd.f32 %v999_v4, %v956_v3 }
 0x1dd   :  { %v1085_v8 = vpack.c.bf16 %v1000_v7, %v996_v5  ;;  %v1128_v9 = vadd.bf16 %v1113_v2, %v1084_v6 }
 0x1df   :  { %v1129_v10 = vadd.bf16 %v1120_v16, %v1085_v8  ;;  %v1131_v15 = vmax.bf16 %v1962_v0, %v1128_v9 }
 0x1e1   :  { %v1132_v11 = vmax.bf16 %v1962_v0, %v1129_v10 }
 0x1e3   :  { %1365 = vmatprep.mubr.bf16.mxu0 %v1132_v11 }
 0x1e4   :  { %1366 = vmatmul.mubr.bf16.vlgmr.msra.gmra.mxu0 %v1131_v15 }
 0x1f4   :  { %v1586_v18 = vpop.f32.mrf.mxu0  ;;  %v1608_v19 = vpop.f32.mrf.mxu1 }
 0x1f6   :  { %v1587_v21 = vpop.f32.mrf.mxu0  ;;  %v1609_v22 = vpop.f32.mrf.mxu1 }
 0x1f7   :  { %v1588_v25 = vadd.f32 %v1587_v21, %v1586_v18  ;;  %v1610_v26 = vadd.f32 %v1609_v22, %v1608_v19 }
 0x1f8   :  { %v1589_v23 = vpop.f32.mrf.mxu0  ;;  %v1611_v24 = vpop.f32.mrf.mxu1 }
 0x1f9   :  { %v1078_v32 = vadd.f32 %v1610_v26, %v1588_v25 }
 0x1fa   :  { %v1590_v28 = vpop.f32.mrf.mxu0  ;;  %v1612_v29 = vpop.f32.mrf.mxu1 }
 0x1fb   :  { %v1591_v30 = vadd.f32 %v1590_v28, %v1589_v23  ;;  %v1613_v31 = vadd.f32 %v1612_v29, %v1611_v24 }
 0x1fd   :  { %v1081_v33 = vadd.f32 %v1613_v31, %v1591_v30 }
 0x1ff   :  { %v1086_v12 = vpack.c.bf16 %v1081_v33, %v1078_v32 }
 0x201   :  { %v1130_v14 = vadd.bf16 %v1127_v34, %v1086_v12 }
 0x203   :  { %v1133_v35 = vmax.bf16 %v1962_v0, %v1130_v14 }
 0x205   :  { %1662 = vmatmul.mubr.bf16.vlgmr.msra.gmra.mxu1 %v1133_v35 }
 0x2a4   :  { %v1630_v36 = vpop.f32.mrf.mxu0 }
 0x2a6   :  { %v1631_v37 = vpop.f32.mrf.mxu0 }
 0x2a7   :  { %v1632_v39 = vadd.f32 %v1631_v37, %v1630_v36 }
 0x2a8   :  { %v1633_v38 = vpop.f32.mrf.mxu0 }
 0x2a9   :  { %v1368_v43 = vadd.f32 %v1632_v39, %v1536_v41 }
 0x2aa   :  { %v1634_v40 = vpop.f32.mrf.mxu0 }
 0x2ab   :  { %v1635_v42 = vadd.f32 %v1634_v40, %v1633_v38 }
 0x2ad   :  { %v1371_v13 = vadd.f32 %v1635_v42, %v1536_v41 }
 0x2c5   :  { %v1408_v44 = vpop.f32.mrf.mxu1 }
 0x2c6   :  { %v1409_v45 = vadd.f32 %v1408_v44, %v1368_v43 }
 0x2c7   :  { %v1663_v46 = vpop.f32.mrf.mxu1 }
 0x2c8   :  { %1839 = vtanh.f32 %v1409_v45 }
 0x2c9   :  { %v1411_v47 = vpop.f32.mrf.mxu1 }
 0x2ca   :  { %v1412_v48 = vadd.f32 %v1411_v47, %v1371_v13 }
 0x2cb   :  { %v1664_v0 = vpop.f32.mrf.mxu1 }
 0x2cc   :  { %1841 = vtanh.f32 %v1412_v48 }
 0x2d5   :  { %v1840_v49 = vpop.eup %1839 }
 0x2d9   :  { %v1842_v50 = vpop.eup %1841 }
 0x2da   :  { %v1568_v51 = vpack.c.bf16 %v1842_v50, %v1840_v49 }
 0x2dc   :  { %1569 = vst [vmem:[%s2078_s7] sm:$0xff] %v1568_v51  }
 0x2dd   :  { %1431 = vsyncpa [#allocation3], 1 }
 0x2de   :  { %1432 = vsyncpa [#allocation5], 1 }
 0x2df   :  { %1433 = vsyncpa [#allocation8], 1 }

// kernel: _actor_forward_impl.1
= control target key start
LH: loop header
LB: loop body
LE: loop exit
PB: predicated region body
PF: predicated region fallthrough
CT: control target
= control target key end

     0   :  { %12 = vsyncpa [#allocation3], 0  ;;  %s2071_s0 = inlined_call_operand.hbm [shape: f32[16,16], index: 0, kind: input, shape index: {}]   ;;  %s2072_s1 = inlined_call_operand.hbm [shape: bf16[16,512], index: 1, kind: input, shape index: {}]   ;;  %s2073_s2 = inlined_call_operand.hbm [shape: f32[1,512], index: 2, kind: input, shape index: {}]   ;;  %s2074_s3 = inlined_call_operand.hbm [shape: bf16[512,384], index: 3, kind: input, shape index: {}]   ;;  %s2075_s4 = inlined_call_operand.vmem [shape: f32[1,384], index: 4, kind: input, shape index: {}]   ;;  %s2076_s5 = inlined_call_operand.hbm [shape: bf16[384,128], index: 5, kind: input, shape index: {}]   ;;  %s2077_s6 = inlined_call_operand.vmem [shape: f32[1,128], index: 6, kind: input, shape index: {}]   ;;  %s2078_s7 = inlined_call_operand.vmem [shape: bf16[16,128], index: 7, kind: output, shape index: {}]  }
   0x1   :  { %13 = vsyncpa [#allocation5], 0 }
   0x2   :  { %14 = vsyncpa [#allocation8], 0  ;;  %s1949_s24 = smov [#allocation4]  }
   0x3   :  { %s32_s25 = sshll.u32 %s1949_s24, 4  ;;  %s33_s25 = int_to_ptr.vmem [resolvable:$true] %s32_s25 }
   0x4   :  { %s1851_s26 = scalar_lea.vmem %s33_s25, 512  ;;  %p1856_p1 = scmp.lt.s32.totalorder %s33_s25, %s33_s25 }
   0x5   :  { %p1852_p0 = scmp.ne.s32.totalorder %s33_s25, %s1851_s26  ;;  %p1857_p2 = scmp.lt.s32.totalorder %s1851_s26, %s1851_s26 }
   0x7   :  { %p1858_p3 = por %p1857_p2, %p1856_p1 }
   0x9   :  { %p1859_p4 = pnand %p1858_p3, %p1852_p0 }
   0xb   :  { %1862 = shalt.err (!%p1859_p4)
}
   0xc   :  { %s1950_s27 = smov 256   ;;  %s1951_s28 = smov 16  }
   0xd   :  { %38 = dma.hbm_to_vmem [thread:$0]  %s2072_s1, 512, %s33_s25, [#allocation5], %s1950_s27, %s1950_s27, %s1951_s28  }
   0xe   :  { %s1952_s8 = smov [#allocation7]  }
   0xf   :  { %s54_s9 = sshll.u32 %s1952_s8, 4  ;;  %s55_s9 = int_to_ptr.vmem [resolvable:$true] %s54_s9 }
  0x10   :  { %s1871_s10 = scalar_lea.vmem %s55_s9, 12288  ;;  %p1876_p6 = scmp.lt.s32.totalorder %s55_s9, %s55_s9 }
  0x11   :  { %p1872_p5 = scmp.ne.s32.totalorder %s55_s9, %s1871_s10  ;;  %p1877_p7 = scmp.lt.s32.totalorder %s1871_s10, %s1871_s10 }
  0x13   :  { %p1878_p8 = por %p1877_p7, %p1876_p6 }
  0x15   :  { %p1879_p9 = pnand %p1878_p8, %p1872_p5 }
  0x17   :  { %1882 = shalt.err (!%p1879_p9)
}
  0x18   :  { %s1953_s11 = smov 192   ;;  %s1954_s12 = smov 12  }
  0x19   :  { %60 = dma.hbm_to_vmem [thread:$0]  %s2074_s3, 12288, %s55_s9, [#allocation8], %s1953_s11, %s1953_s11, %s1954_s12  }
  0x1a   :  { %s1955_s15 = smov [#allocation2]  }
  0x1b   :  { %s20_s16 = sshll.u32 %s1955_s15, 4  ;;  %s21_s16 = int_to_ptr.vmem [resolvable:$true] %s20_s16 }
  0x1c   :  { %s1891_s1 = scalar_lea.vmem %s21_s16, 256  ;;  %p1896_p11 = scmp.lt.s32.totalorder %s21_s16, %s21_s16 }
  0x1d   :  { %p1892_p10 = scmp.ne.s32.totalorder %s21_s16, %s1891_s1  ;;  %p1897_p12 = scmp.lt.s32.totalorder %s1891_s1, %s1891_s1 }
  0x1f   :  { %p1898_p13 = por %p1897_p12, %p1896_p11 }
  0x21   :  { %p1899_p0 = pnand %p1898_p13, %p1892_p10 }
  0x23   :  { %1902 = shalt.err (!%p1899_p0)
}
  0x24   :  { %s1956_s17 = smov 128   ;;  %s1957_s18 = smov 8  }
  0x25   :  { %26 = dma.hbm_to_vmem [thread:$0]  %s2071_s0, 256, %s21_s16, [#allocation3], %s1956_s17, %s1956_s17, %s1957_s18  }
  0x26   :  { %s1958_s21 = smov [#allocation6]   ;;  %s1959_s3 = smov [#allocation9]  }
  0x27   :  { %s45_s22 = sshll.u32 %s1958_s21, 4  ;;  %s68_s23 = sshll.u32 %s1959_s3, 4  ;;  %s46_s22 = int_to_ptr.vmem [resolvable:$true] %s45_s22  ;;  %s69_s23 = int_to_ptr.vmem [resolvable:$true] %s68_s23 }
  0x28   :  { %s1911_s24 = scalar_lea.vmem %s46_s22, 64  ;;  %p1916_p2 = scmp.lt.s32.totalorder %s46_s22, %s46_s22 }
  0x29   :  { %p1912_p1 = scmp.ne.s32.totalorder %s46_s22, %s1911_s24  ;;  %p1917_p3 = scmp.lt.s32.totalorder %s1911_s24, %s1911_s24 }
  0x2b   :  { %p1918_p4 = por %p1917_p3, %p1916_p2 }
  0x2d   :  { %p1919_p5 = pnand %p1918_p4, %p1912_p1 }
  0x2f   :  { %1922 = shalt.err (!%p1919_p5)
}
  0x30   :  { %48 = dma.hbm_to_vmem [thread:$0]  %s2073_s2, 64, %s46_s22, [#allocation5]  }
  0x31   :  { %s1931_s27 = scalar_lea.vmem %s69_s23, 3072  ;;  %p1936_p7 = scmp.lt.s32.totalorder %s69_s23, %s69_s23 }
  0x32   :  { %p1932_p6 = scmp.ne.s32.totalorder %s69_s23, %s1931_s27  ;;  %p1937_p8 = scmp.lt.s32.totalorder %s1931_s27, %s1931_s27 }
  0x34   :  { %p1938_p9 = por %p1937_p8, %p1936_p7 }
  0x36   :  { %p1939_p10 = pnand %p1938_p9, %p1932_p6 }
  0x38   :  { %1942 = shalt.err (!%p1939_p10)
}
  0x39   :  { %s1960_s0 = smov 64   ;;  %s1961_s28 = smov 4  }
  0x3a   :  { %74 = dma.hbm_to_vmem [thread:$0]  %s2076_s5, 3072, %s69_s23, [#allocation8], %s1960_s0, %s1960_s0, %s1961_s28  }
  0x3b   :  { %1943 = dma.done.wait [#allocation3], 256  }
  0x3c   :  { %1944 = vsyncadd [#allocation3], 4294967040 }
  0x3d   :  { %1945 = dma.done.wait [#allocation5], 576  }
  0x3e   :  { %1946 = vsyncadd [#allocation5], 4294966720 }
  0x3f   :  { %1947 = dma.done.wait [#allocation8], 15360  }
  0x40   :  { %1948 = vsyncadd [#allocation8], 4294951936  ;;  %v1962_v0 = vmov 0   ;;  %v1681_v1 = vld [vmem:[#allocation4 + $0x4] ss:$16 sps:$4 sm:$0xff]   ;;  %v94_v6 = vld [vmem:[#allocation2 + $0x8] sm:$0xff] }
  0x41   :  { %156 = vmatprep.mubr.bf16.mxu0 %v1962_v0  ;;  %199 = vmatprep.mubr.bf16.mxu1 %v1962_v0  ;;  %v1683_v2 = vld [vmem:[#allocation4 + $0xc] ss:$16 sps:$4 sm:$0xff]   ;;  %v1685_v3 = vld [vmem:[#allocation4] ss:$16 sps:$4 sm:$0xff]   ;;  %v1686_v4 = vld [vmem:[#allocation4 + $0x8] ss:$16 sps:$4 sm:$0xff]  }
  0x42   :  { %138 = vmatprep.subr.bf16.mxu0 %v1681_v1  ;;  %v93_v5 = vld [vmem:[#allocation2] sm:$0xff]  ;;  %181 = vmatprep.subr.bf16.mxu1 %v1683_v2  ;;  %vm120_vm0 = vcmask 130048   ;;  %v1687_v8 = vld [vmem:[#allocation7 + $0xa8] ss:$12 sps:$4 sm:$0xff]   ;;  %v1699_v18 = vld [vmem:[#allocation7 + $0x78] ss:$12 sps:$4 sm:$0xff]  }
  0x43   :  { %139 = vmatpush1.bf16.msra.mxu0 %v1685_v3  ;;  %182 = vmatpush1.bf16.msra.mxu1 %v1686_v4  ;;  %v95_v7 = vpack.c.bf16 %v94_v6, %v93_v5  ;;  %v1689_v9 = vld [vmem:[#allocation7 + $0xac] ss:$12 sps:$4 sm:$0xff]   ;;  %v1690_v10 = vld [vmem:[#allocation7 + $0x228] ss:$12 sps:$4 sm:$0xff]   ;;  %v1693_v13 = vld [vmem:[#allocation7 + $0x90] ss:$12 sps:$4 sm:$0xff]  }
  0x44   :  { %v1692_v11 = vld [vmem:[#allocation7 + $0x22c] ss:$12 sps:$4 sm:$0xff]   ;;  %916 = vmatprep.subr.bf16.mxu0 %v1689_v9  ;;  %v1695_v12 = vld [vmem:[#allocation7 + $0x94] ss:$12 sps:$4 sm:$0xff]   ;;  %v1696_v15 = vld [vmem:[#allocation7 + $0x210] ss:$12 sps:$4 sm:$0xff]  }
  0x45   :  { %959 = vmatprep.subr.bf16.mxu1 %v1692_v11  ;;  %v1698_v14 = vld [vmem:[#allocation7 + $0x214] ss:$12 sps:$4 sm:$0xff]   ;;  %v1701_v16 = vld [vmem:[#allocation7 + $0x7c] ss:$12 sps:$4 sm:$0xff]   ;;  %v1702_v19 = vld [vmem:[#allocation7 + $0x1f8] ss:$12 sps:$4 sm:$0xff]   ;;  %v216_v11 = vlaneseq }
  0x46   :  { %1438 = vmatmul.mubr.msk.bf16.vlgmr.msra.gmra.mxu0 %vm120_vm0, %v95_v7  ;;  %1439 = vmatmul.mubr.msk.bf16.vlgmr.msra.gmra.mxu1 %vm120_vm0, %v95_v7  ;;  %v1704_v17 = vld [vmem:[#allocation7 + $0x1fc] ss:$12 sps:$4 sm:$0xff]   ;;  %v1707_v20 = vld [vmem:[#allocation7 + $0x64] ss:$12 sps:$4 sm:$0xff]   ;;  %v1705_v22 = vld [vmem:[#allocation7 + $0x60] ss:$12 sps:$4 sm:$0xff]  }
  0x47   :  { %917 = vmatpush1.bf16.msra.mxu0 %v1687_v8  ;;  %960 = vmatpush1.bf16.msra.mxu1 %v1690_v10  ;;  %v1710_v21 = vld [vmem:[#allocation7 + $0x1e4] ss:$12 sps:$4 sm:$0xff]   ;;  %v1708_v23 = vld [vmem:[#allocation7 + $0x1e0] ss:$12 sps:$4 sm:$0xff]   ;;  %v1711_v26 = vld [vmem:[#allocation7 + $0x48] ss:$12 sps:$4 sm:$0xff]  }
  0x48   :  { %918 = vmatprep.subr.bf16.mxu0 %v1695_v12  ;;  %961 = vmatprep.subr.bf16.mxu1 %v1698_v14  ;;  %v1713_v24 = vld [vmem:[#allocation7 + $0x4c] ss:$12 sps:$4 sm:$0xff]   ;;  %v1714_v27 = vld [vmem:[#allocation7 + $0x1c8] ss:$12 sps:$4 sm:$0xff]   ;;  %v1717_v30 = vld [vmem:[#allocation7 + $0x30] ss:$12 sps:$4 sm:$0xff]  }
  0x49   :  { %v1716_v25 = vld [vmem:[#allocation7 + $0x1cc] ss:$12 sps:$4 sm:$0xff]   ;;  %v1719_v28 = vld [vmem:[#allocation7 + $0x34] ss:$12 sps:$4 sm:$0xff]   ;;  %v1720_v31 = vld [vmem:[#allocation7 + $0x1b0] ss:$12 sps:$4 sm:$0xff]  }
  0x4a   :  { %v1722_v29 = vld [vmem:[#allocation7 + $0x1b4] ss:$12 sps:$4 sm:$0xff]   ;;  %v1725_v32 = vld [vmem:[#allocation7 + $0x1c] ss:$12 sps:$4 sm:$0xff]   ;;  %v1723_v34 = vld [vmem:[#allocation7 + $0x18] ss:$12 sps:$4 sm:$0xff]  }
  0x4b   :  { %919 = vmatpush1.bf16.msra.mxu0 %v1693_v13  ;;  %962 = vmatpush1.bf16.msra.mxu1 %v1696_v15  ;;  %v1728_v33 = vld [vmem:[#allocation7 + $0x19c] ss:$12 sps:$4 sm:$0xff]   ;;  %v1726_v35 = vld [vmem:[#allocation7 + $0x198] ss:$12 sps:$4 sm:$0xff]   ;;  %v1729_v38 = vld [vmem:[#allocation7] ss:$12 sps:$4 sm:$0xff]  }
  0x4c   :  { %920 = vmatprep.subr.bf16.mxu0 %v1701_v16  ;;  %963 = vmatprep.subr.bf16.mxu1 %v1704_v17  ;;  %v1731_v36 = vld [vmem:[#allocation7 + $0x4] ss:$12 sps:$4 sm:$0xff]   ;;  %v1732_v39 = vld [vmem:[#allocation7 + $0x180] ss:$12 sps:$4 sm:$0xff]   ;;  %v1735_v42 = vld [vmem:[#allocation7 + $0x168] ss:$12 sps:$4 sm:$0xff]  }
  0x4d   :  { %v1734_v37 = vld [vmem:[#allocation7 + $0x184] ss:$12 sps:$4 sm:$0xff]   ;;  %v1737_v40 = vld [vmem:[#allocation7 + $0x16c] ss:$12 sps:$4 sm:$0xff]   ;;  %v1738_v43 = vld [vmem:[#allocation7 + $0x2e8] ss:$12 sps:$4 sm:$0xff]  }
  0x4e   :  { %v1740_v41 = vld [vmem:[#allocation7 + $0x2ec] ss:$12 sps:$4 sm:$0xff]   ;;  %v1743_v44 = vld [vmem:[#allocation7 + $0x154] ss:$12 sps:$4 sm:$0xff]   ;;  %v1741_v46 = vld [vmem:[#allocation7 + $0x150] ss:$12 sps:$4 sm:$0xff]  }
  0x4f   :  { %921 = vmatpush1.bf16.msra.mxu0 %v1699_v18  ;;  %964 = vmatpush1.bf16.msra.mxu1 %v1702_v19  ;;  %v1746_v45 = vld [vmem:[#allocation7 + $0x2d4] ss:$12 sps:$4 sm:$0xff]   ;;  %v1744_v47 = vld [vmem:[#allocation7 + $0x2d0] ss:$12 sps:$4 sm:$0xff]   ;;  %v1747_v50 = vld [vmem:[#allocation7 + $0x138] ss:$12 sps:$4 sm:$0xff]  }
  0x50   :  { %922 = vmatprep.subr.bf16.mxu0 %v1707_v20  ;;  %965 = vmatprep.subr.bf16.mxu1 %v1710_v21  ;;  %v1749_v48 = vld [vmem:[#allocation7 + $0x13c] ss:$12 sps:$4 sm:$0xff]   ;;  %v1750_v51 = vld [vmem:[#allocation7 + $0x2b8] ss:$12 sps:$4 sm:$0xff]   ;;  %v1753_v54 = vld [vmem:[#allocation7 + $0x120] ss:$12 sps:$4 sm:$0xff]  }
  0x51   :  { %v1752_v49 = vld [vmem:[#allocation7 + $0x2bc] ss:$12 sps:$4 sm:$0xff]   ;;  %v1755_v52 = vld [vmem:[#allocation7 + $0x124] ss:$12 sps:$4 sm:$0xff]   ;;  %v1756_v55 = vld [vmem:[#allocation7 + $0x2a0] ss:$12 sps:$4 sm:$0xff]  }
  0x52   :  { %v1758_v53 = vld [vmem:[#allocation7 + $0x2a4] ss:$12 sps:$4 sm:$0xff]   ;;  %v1761_v56 = vld [vmem:[#allocation7 + $0x10c] ss:$12 sps:$4 sm:$0xff]   ;;  %v1759_v58 = vld [vmem:[#allocation7 + $0x108] ss:$12 sps:$4 sm:$0xff]  }
  0x53   :  { %923 = vmatpush1.bf16.msra.mxu0 %v1705_v22  ;;  %966 = vmatpush1.bf16.msra.mxu1 %v1708_v23  ;;  %v1764_v57 = vld [vmem:[#allocation7 + $0x28c] ss:$12 sps:$4 sm:$0xff]   ;;  %v1762_v59 = vld [vmem:[#allocation7 + $0x288] ss:$12 sps:$4 sm:$0xff]   ;;  %v1765_v62 = vld [vmem:[#allocation7 + $0xf0] ss:$12 sps:$4 sm:$0xff]  }
  0x54   :  { %924 = vmatprep.subr.bf16.mxu0 %v1713_v24  ;;  %967 = vmatprep.subr.bf16.mxu1 %v1716_v25  ;;  %v1767_v60 = vld [vmem:[#allocation7 + $0xf4] ss:$12 sps:$4 sm:$0xff]   ;;  %v1768_v63 = vld [vmem:[#allocation7 + $0x270] ss:$12 sps:$4 sm:$0xff]   ;;  %v1771_v3 = vld [vmem:[#allocation7 + $0xd8] ss:$12 sps:$4 sm:$0xff]  }
  0x55   :  { %v1770_v61 = vld [vmem:[#allocation7 + $0x274] ss:$12 sps:$4 sm:$0xff]   ;;  %v1773_v1 = vld [vmem:[#allocation7 + $0xdc] ss:$12 sps:$4 sm:$0xff]   ;;  %v1774_v4 = vld [vmem:[#allocation7 + $0x258] ss:$12 sps:$4 sm:$0xff]  }
  0x56   :  { %v1776_v2 = vld [vmem:[#allocation7 + $0x25c] ss:$12 sps:$4 sm:$0xff]   ;;  %v1779_v5 = vld [vmem:[#allocation7 + $0xc4] ss:$12 sps:$4 sm:$0xff]   ;;  %v1777_v7 = vld [vmem:[#allocation7 + $0xc0] ss:$12 sps:$4 sm:$0xff]  }
  0x57   :  { %925 = vmatpush1.bf16.msra.mxu0 %v1711_v26  ;;  %968 = vmatpush1.bf16.msra.mxu1 %v1714_v27  ;;  %v1782_v6 = vld [vmem:[#allocation7 + $0x244] ss:$12 sps:$4 sm:$0xff]   ;;  %v1780_v8 = vld [vmem:[#allocation7 + $0x240] ss:$12 sps:$4 sm:$0xff]   ;;  %v2022_v12 = vshrl.u32 %v216_v11, 7  ;;  %vm1964_vm1 = vmmov 0  }
  0x58   :  { %926 = vmatprep.subr.bf16.mxu0 %v1719_v28  ;;  %969 = vmatprep.subr.bf16.mxu1 %v1722_v29  ;;  %v1783_v9 = vld [vmem:[#allocation7 + $0x170] ss:$12 sps:$4 sm:$0xff]   ;;  %v1805_v11 = vld [vmem:[#allocation7 + $0x38] ss:$12 sps:$4 sm:$0xff]  }
  0x59   :  { %v1784_v10 = vld [vmem:[#allocation7 + $0x2f0] ss:$12 sps:$4 sm:$0xff]   ;;  %v2025_v13 = vsub.s32 0, %v2022_v12  ;;  %v226_v14 = vsub.s32 2, %v2022_v12  ;;  %v222_v16 = vsub.s32 1, %v2022_v12  ;;  %v230_v17 = vsub.s32 3, %v2022_v12 }
  0x5a   :  { %v214_v15 = vld [vmem:[#allocation6] sm:$0xf] }
  0x5b   :  { %927 = vmatpush1.bf16.msra.mxu0 %v1717_v30  ;;  %970 = vmatpush1.bf16.msra.mxu1 %v1720_v31  ;;  %v219_v18 = vrot.slane %v214_v15, %v2025_v13  ;;  %v227_v19 = vrot.slane %v214_v15, %v226_v14  ;;  %v223_v20 = vrot.slane %v214_v15, %v222_v16 }
  0x5c   :  { %928 = vmatprep.subr.bf16.mxu0 %v1725_v32  ;;  %971 = vmatprep.subr.bf16.mxu1 %v1728_v33  ;;  %v231_v21 = vrot.slane %v214_v15, %v230_v17  ;;  %v1806_v15 = vld [vmem:[#allocation7 + $0x1b8] ss:$12 sps:$4 sm:$0xff]   ;;  %v1807_v17 = vld [vmem:[#allocation7 + $0xe0] ss:$12 sps:$4 sm:$0xff]  }
  0x5d   :  { %v236_v22 = vpack.c.bf16 %v219_v18, %v219_v18  ;;  %v238_v23 = vpack.c.bf16 %v227_v19, %v227_v19  ;;  %v237_v24 = vpack.c.bf16 %v223_v20, %v223_v20  ;;  %v1808_v18 = vld [vmem:[#allocation7 + $0x260] ss:$12 sps:$4 sm:$0xff]  }
  0x5e   :  { %v239_v25 = vpack.c.bf16 %v231_v21, %v231_v21  ;;  %v1809_v19 = vld [vmem:[#allocation7 + $0x20] ss:$12 sps:$4 sm:$0xff]   ;;  %v1811_v21 = vld [vmem:[#allocation7 + $0xc8] ss:$12 sps:$4 sm:$0xff]  }
  0x5f   :  { %929 = vmatpush1.bf16.msra.mxu0 %v1723_v34  ;;  %972 = vmatpush1.bf16.msra.mxu1 %v1726_v35  ;;  %v241_v28 = vpack.i.b16 %v236_v22, %v236_v22  ;;  %v255_v29 = vpack.i.b16 %v238_v23, %v238_v23  ;;  %v248_v30 = vpack.i.b16 %v237_v24, %v237_v24  ;;  %v1810_v20 = vld [vmem:[#allocation7 + $0x1a0] ss:$12 sps:$4 sm:$0xff]   ;;  %v1812_v22 = vld [vmem:[#allocation7 + $0x248] ss:$12 sps:$4 sm:$0xff]  }
  0x60   :  { %930 = vmatprep.subr.bf16.mxu0 %v1731_v36  ;;  %973 = vmatprep.subr.bf16.mxu1 %v1734_v37  ;;  %v262_v31 = vpack.i.b16 %v239_v25, %v239_v25  ;;  %v1813_v23 = vld [vmem:[#allocation7 + $0x8] ss:$12 sps:$4 sm:$0xff]   ;;  %v1815_v25 = vld [vmem:[#allocation9 + $0x78] sm:$0xff]  }
  0x61   :  { %v246_v35 = vrot.slane %v241_v28, %v2025_v13  ;;  %v260_v37 = vrot.slane %v255_v29, %v2025_v13  ;;  %v1814_v24 = vld [vmem:[#allocation7 + $0x188] ss:$12 sps:$4 sm:$0xff]  }
  0x62   :  { %v1818_v28 = vld [vmem:[#allocation9 + $0x30] sm:$0xff]   ;;  %v1819_v29 = vld [vmem:[#allocation9 + $0x68] sm:$0xff]  }
  0x63   :  { %931 = vmatpush1.bf16.msra.mxu0 %v1729_v38  ;;  %974 = vmatpush1.bf16.msra.mxu1 %v1732_v39 }
  0x64   :  { %932 = vmatprep.subr.bf16.mxu0 %v1737_v40  ;;  %975 = vmatprep.subr.bf16.mxu1 %v1740_v41  ;;  %v253_v40 = vrot.slane %v248_v30, %v2025_v13  ;;  %v267_v41 = vrot.slane %v262_v31, %v2025_v13  ;;  %v1820_v30 = vld [vmem:[#allocation9 + $0x28] sm:$0xff]   ;;  %v1821_v31 = vld [vmem:[#allocation9 + $0x60] sm:$0xff]  }
  0x67   :  { %933 = vmatpush2.bf16.msra.mxu0 %v1735_v42  ;;  %976 = vmatpush2.bf16.msra.mxu1 %v1738_v43 }
  0x68   :  { %934 = vmatprep.subr.bf16.mxu0 %v1743_v44  ;;  %977 = vmatprep.subr.bf16.mxu1 %v1746_v45 }
  0x6b   :  { %935 = vmatpush2.bf16.msra.mxu0 %v1741_v46  ;;  %978 = vmatpush2.bf16.msra.mxu1 %v1744_v47 }
  0x6c   :  { %936 = vmatprep.subr.bf16.mxu0 %v1749_v48  ;;  %979 = vmatprep.subr.bf16.mxu1 %v1752_v49 }
  0x6f   :  { %937 = vmatpush2.bf16.msra.mxu0 %v1747_v50  ;;  %980 = vmatpush2.bf16.msra.mxu1 %v1750_v51 }
  0x70   :  { %938 = vmatprep.subr.bf16.mxu0 %v1755_v52  ;;  %981 = vmatprep.subr.bf16.mxu1 %v1758_v53  ;;  %v1785_v52 = vld [vmem:[#allocation7 + $0xb0] ss:$12 sps:$4 sm:$0xff]  }
  0x71   :  { %v1786_v53 = vld [vmem:[#allocation7 + $0x230] ss:$12 sps:$4 sm:$0xff]  }
  0x73   :  { %939 = vmatpush2.bf16.msra.mxu0 %v1753_v54  ;;  %982 = vmatpush2.bf16.msra.mxu1 %v1756_v55 }
  0x74   :  { %940 = vmatprep.subr.bf16.mxu0 %v1761_v56  ;;  %983 = vmatprep.subr.bf16.mxu1 %v1764_v57  ;;  %v1787_v56 = vld [vmem:[#allocation7 + $0x158] ss:$12 sps:$4 sm:$0xff]  }
  0x75   :  { %v1788_v57 = vld [vmem:[#allocation7 + $0x2d8] ss:$12 sps:$4 sm:$0xff]  }
  0x77   :  { %941 = vmatpush2.bf16.msra.mxu0 %v1759_v58  ;;  %984 = vmatpush2.bf16.msra.mxu1 %v1762_v59  ;;  %v1789_v58 = vld [vmem:[#allocation7 + $0x98] ss:$12 sps:$4 sm:$0xff]  }
  0x78   :  { %942 = vmatprep.subr.bf16.mxu0 %v1767_v60  ;;  %985 = vmatprep.subr.bf16.mxu1 %v1770_v61  ;;  %v1790_v59 = vld [vmem:[#allocation7 + $0x218] ss:$12 sps:$4 sm:$0xff]   ;;  %v1791_v60 = vld [vmem:[#allocation7 + $0x140] ss:$12 sps:$4 sm:$0xff]  }
  0x79   :  { %v1792_v61 = vld [vmem:[#allocation7 + $0x2c0] ss:$12 sps:$4 sm:$0xff]  }
  0x7b   :  { %943 = vmatpush2.bf16.msra.mxu0 %v1765_v62  ;;  %986 = vmatpush2.bf16.msra.mxu1 %v1768_v63  ;;  %v1793_v62 = vld [vmem:[#allocation7 + $0x80] ss:$12 sps:$4 sm:$0xff]  }
  0x7c   :  { %944 = vmatprep.subr.bf16.mxu0 %v1773_v1  ;;  %987 = vmatprep.subr.bf16.mxu1 %v1776_v2  ;;  %v1794_v63 = vld [vmem:[#allocation7 + $0x200] ss:$12 sps:$4 sm:$0xff]   ;;  %v1795_v1 = vld [vmem:[#allocation7 + $0x128] ss:$12 sps:$4 sm:$0xff]  }
  0x7d   :  { %v1796_v2 = vld [vmem:[#allocation7 + $0x2a8] ss:$12 sps:$4 sm:$0xff]  }
  0x7f   :  { %945 = vmatpush2.bf16.msra.mxu0 %v1771_v3  ;;  %988 = vmatpush2.bf16.msra.mxu1 %v1774_v4  ;;  %v1797_v3 = vld [vmem:[#allocation7 + $0x68] ss:$12 sps:$4 sm:$0xff]  }
  0x80   :  { %946 = vmatprep.subr.bf16.mxu0 %v1779_v5  ;;  %989 = vmatprep.subr.bf16.mxu1 %v1782_v6  ;;  %v1798_v4 = vld [vmem:[#allocation7 + $0x1e8] ss:$12 sps:$4 sm:$0xff]   ;;  %v1799_v5 = vld [vmem:[#allocation7 + $0x110] ss:$12 sps:$4 sm:$0xff]  }
  0x81   :  { %v1800_v6 = vld [vmem:[#allocation7 + $0x290] ss:$12 sps:$4 sm:$0xff]  }
  0x83   :  { %947 = vmatpush2.bf16.msra.mxu0 %v1777_v7  ;;  %990 = vmatpush2.bf16.msra.mxu1 %v1780_v8  ;;  %v1801_v7 = vld [vmem:[#allocation7 + $0x50] ss:$12 sps:$4 sm:$0xff]  }
  0x84   :  { %1570 = vmatprep.subr.bf16.mxu0 %v1783_v9  ;;  %1592 = vmatprep.subr.bf16.mxu1 %v1784_v10  ;;  %v1802_v8 = vld [vmem:[#allocation7 + $0x1d0] ss:$12 sps:$4 sm:$0xff]   ;;  %v1803_v9 = vld [vmem:[#allocation7 + $0xf8] ss:$12 sps:$4 sm:$0xff]  }
  0x85   :  { %v1804_v10 = vld [vmem:[#allocation7 + $0x278] ss:$12 sps:$4 sm:$0xff]  }
 0x106   :  { %v158_v26 = vpop.f32.mrf.mxu0  ;;  %v201_v27 = vpop.f32.mrf.mxu1 }
 0x108   :  { %v160_v32 = vpop.f32.mrf.mxu0  ;;  %v203_v33 = vpop.f32.mrf.mxu1 }
 0x10a   :  { %v162_v34 = vpop.f32.mrf.mxu0  ;;  %v205_v36 = vpop.f32.mrf.mxu1 }
 0x10b   :  { %v210_v38 = vpack.c.bf16 %v162_v34, %v158_v26  ;;  %v212_v39 = vpack.c.bf16 %v205_v36, %v201_v27  ;;  %v1816_v26 = vld [vmem:[#allocation9 + $0x38] sm:$0xff]   ;;  %v1817_v27 = vld [vmem:[#allocation9 + $0x70] sm:$0xff]  }
 0x10c   :  { %v164_v42 = vpop.f32.mrf.mxu0  ;;  %v207_v43 = vpop.f32.mrf.mxu1  ;;  %v1824_v34 = vld [vmem:[#allocation9 + $0x18] sm:$0xff]   ;;  %v1826_v36 = vld [vmem:[#allocation9 + $0x10] sm:$0xff]  }
 0x10d   :  { %v211_v44 = vpack.c.bf16 %v164_v42, %v160_v32  ;;  %v213_v45 = vpack.c.bf16 %v207_v43, %v203_v33  ;;  %v268_v46 = vadd.bf16 %v246_v35, %v210_v38  ;;  %v270_v47 = vadd.bf16 %v260_v37, %v212_v39  ;;  %v1822_v32 = vld [vmem:[#allocation9 + $0x20] sm:$0xff]   ;;  %v1823_v33 = vld [vmem:[#allocation9 + $0x58] sm:$0xff]   ;;  %v1825_v35 = vld [vmem:[#allocation9 + $0x50] sm:$0xff]  }
 0x10e   :  { %v1827_v37 = vld [vmem:[#allocation9 + $0x48] sm:$0xff]   ;;  %v1829_v39 = vld [vmem:[#allocation9 + $0x40] sm:$0xff]   ;;  %v1963_v42 = vmov 0.0   ;;  %v1832_v43 = vld [vmem:[#allocation9 + $0xb0] sm:$0xff]  }
 0x10f   :  { %v269_v48 = vadd.bf16 %v253_v40, %v211_v44  ;;  %v271_v49 = vadd.bf16 %v267_v41, %v213_v45  ;;  %v2042_v54 = vmax.bf16 %v1962_v0, %v268_v46  ;;  %v2045_v55 = vmax.bf16 %v1962_v0, %v270_v47  ;;  %v1828_v38 = vld [vmem:[#allocation9 + $0x8] sm:$0xff]   ;;  %v1830_v40 = vld [vmem:[#allocation9] sm:$0xff]   ;;  %v1831_v41 = vld [vmem:[#allocation9 + $0xb8] sm:$0xff]  }
 0x110   :  { %v1833_v44 = vld [vmem:[#allocation9 + $0xa8] sm:$0xff]   ;;  %v1834_v45 = vld [vmem:[#allocation9 + $0xa0] sm:$0xff]   ;;  %v1835_v46 = vld [vmem:[#allocation9 + $0x98] sm:$0xff]  }
 0x111   :  { %v273_v50 = vmax.bf16 %v1962_v0, %v269_v48  ;;  %v275_v51 = vmax.bf16 %v1962_v0, %v271_v49  ;;  %v1836_v47 = vld [vmem:[#allocation9 + $0x90] sm:$0xff]   ;;  %v1837_v48 = vld [vmem:[#allocation9 + $0x88] sm:$0xff]   ;;  %v1838_v49 = vld [vmem:[#allocation9 + $0x80] sm:$0xff]  }
 0x113   :  { %948 = vmatprep.mubr.bf16.mxu0 %v273_v50  ;;  %991 = vmatprep.mubr.bf16.mxu1 %v275_v51 }
 0x114   :  { %949 = vmatmul.mubr.bf16.vlgmr.msra.gmra.mxu0 %v2042_v54  ;;  %992 = vmatmul.mubr.bf16.vlgmr.msra.gmra.mxu1 %v2045_v55 }
 0x115   :  { %1571 = vmatpush3.bf16.msra.mxu0 %v1785_v52  ;;  %1593 = vmatpush3.bf16.msra.mxu1 %v1786_v53 }
 0x116   :  { %1034 = vmatprep.mubr.bf16.mxu0 %v273_v50  ;;  %1075 = vmatprep.mubr.bf16.mxu1 %v275_v51  ;;  %v1087_v50 = vld [vmem:[%s2075_s4] sm:$0x7] }
 0x117   :  { %1572 = vmatprep.subr.bf16.mxu0 %v1787_v56  ;;  %1594 = vmatprep.subr.bf16.mxu1 %v1788_v57  ;;  %v1092_v51 = vrot.slane %v1087_v50, %v2025_v13  ;;  %v1096_v52 = vrot.slane %v1087_v50, %v222_v16 }
 0x119   :  { %1573 = vmatpush3.bf16.msra.mxu0 %v1789_v58  ;;  %1595 = vmatpush3.bf16.msra.mxu1 %v1790_v59  ;;  %v1104_v53 = vpack.c.bf16 %v1092_v51, %v1092_v51 }
 0x11a   :  { %1574 = vmatprep.subr.bf16.mxu0 %v1791_v60  ;;  %1596 = vmatprep.subr.bf16.mxu1 %v1792_v61 }
 0x11b   :  { %v1108_v59 = vpack.i.b16 %v1104_v53, %v1104_v53 }
 0x11d   :  { %1575 = vmatpush3.bf16.msra.mxu0 %v1793_v62  ;;  %1597 = vmatpush3.bf16.msra.mxu1 %v1794_v63 }
 0x11e   :  { %1576 = vmatprep.subr.bf16.mxu0 %v1795_v1  ;;  %1598 = vmatprep.subr.bf16.mxu1 %v1796_v2  ;;  %v1113_v2 = vrot.slane %v1108_v59, %v2025_v13 }
 0x121   :  { %1577 = vmatpush3.bf16.msra.mxu0 %v1797_v3  ;;  %1599 = vmatpush3.bf16.msra.mxu1 %v1798_v4 }
 0x122   :  { %1578 = vmatprep.subr.bf16.mxu0 %v1799_v5  ;;  %1600 = vmatprep.subr.bf16.mxu1 %v1800_v6 }
 0x125   :  { %1579 = vmatpush3.bf16.msra.mxu0 %v1801_v7  ;;  %1601 = vmatpush3.bf16.msra.mxu1 %v1802_v8 }
 0x126   :  { %1580 = vmatprep.subr.bf16.mxu0 %v1803_v9  ;;  %1602 = vmatprep.subr.bf16.mxu1 %v1804_v10 }
 0x129   :  { %1581 = vmatpush3.bf16.msra.mxu0 %v1805_v11  ;;  %1603 = vmatpush3.bf16.msra.mxu1 %v1806_v15 }
 0x12a   :  { %1582 = vmatprep.subr.bf16.mxu0 %v1807_v17  ;;  %1604 = vmatprep.subr.bf16.mxu1 %v1808_v18  ;;  %v1100_v17 = vrot.slane %v1087_v50, %v226_v14 }
 0x12d   :  { %1583 = vmatpush3.bf16.msra.mxu0 %v1809_v19  ;;  %1605 = vmatpush3.bf16.msra.mxu1 %v1810_v20  ;;  %v1106_v20 = vpack.c.bf16 %v1100_v17, %v1100_v17 }
 0x12e   :  { %1584 = vmatprep.subr.bf16.mxu0 %v1811_v21  ;;  %1606 = vmatprep.subr.bf16.mxu1 %v1812_v22 }
 0x131   :  { %1585 = vmatpush3.bf16.msra.mxu0 %v1813_v23  ;;  %1607 = vmatpush3.bf16.msra.mxu1 %v1814_v24 }
 0x132   :  { %1614 = vmatprep.subr.bf16.mxu0 %v1815_v25  ;;  %1645 = vmatprep.subr.bf16.mxu1 %v1963_v42 }
 0x134   :  { %1035 = vmatmul.mubr.bf16.vlgmr.msra.gmra.mxu0 %v2042_v54  ;;  %1076 = vmatmul.mubr.bf16.vlgmr.msra.gmra.mxu1 %v2045_v55  ;;  %v1105_v54 = vpack.c.bf16 %v1096_v52, %v1096_v52 }
 0x135   :  { %1615 = vmatpush3.bf16.msra.mxu0 %v1816_v26  ;;  %1646 = vmatpush3.bf16.msra.mxu1 %v1831_v41  ;;  %v1536_v41 = vld [vmem:[%s2077_s6] ss:$0 sm:$0xff] }
 0x136   :  { %1616 = vmatprep.subr.bf16.mxu0 %v1817_v27  ;;  %1647 = vmatprep.subr.bf16.mxu1 %v1963_v42  ;;  %v1115_v60 = vpack.i.b16 %v1105_v54, %v1105_v54  ;;  %v1122_v27 = vpack.i.b16 %v1106_v20, %v1106_v20 }
 0x137   :  { %1661 = vmatprep.mubr.msk.bf16.mxu1 %vm1964_vm1, %v1963_v42 }
 0x138   :  { %v1120_v16 = vrot.slane %v1115_v60, %v2025_v13 }
 0x139   :  { %1617 = vmatpush3.bf16.msra.mxu0 %v1818_v28  ;;  %1648 = vmatpush3.bf16.msra.mxu1 %v1832_v43 }
 0x13a   :  { %1618 = vmatprep.subr.bf16.mxu0 %v1819_v29  ;;  %1649 = vmatprep.subr.bf16.mxu1 %v1963_v42 }
 0x13d   :  { %1619 = vmatpush3.bf16.msra.mxu0 %v1820_v30  ;;  %1650 = vmatpush3.bf16.msra.mxu1 %v1833_v44 }
 0x13e   :  { %1620 = vmatprep.subr.bf16.mxu0 %v1821_v31  ;;  %1651 = vmatprep.subr.bf16.mxu1 %v1963_v42 }
 0x141   :  { %1621 = vmatpush3.bf16.msra.mxu0 %v1822_v32  ;;  %1652 = vmatpush3.bf16.msra.mxu1 %v1834_v45 }
 0x142   :  { %1622 = vmatprep.subr.bf16.mxu0 %v1823_v33  ;;  %1653 = vmatprep.subr.bf16.mxu1 %v1963_v42 }
 0x145   :  { %1623 = vmatpush3.bf16.msra.mxu0 %v1824_v34  ;;  %1654 = vmatpush3.bf16.msra.mxu1 %v1835_v46  ;;  %v1127_v34 = vrot.slane %v1122_v27, %v2025_v13 }
 0x146   :  { %1624 = vmatprep.subr.bf16.mxu0 %v1825_v35  ;;  %1655 = vmatprep.subr.bf16.mxu1 %v1963_v42 }
 0x149   :  { %1625 = vmatpush3.bf16.msra.mxu0 %v1826_v36  ;;  %1656 = vmatpush3.bf16.msra.mxu1 %v1836_v47 }
 0x14a   :  { %1626 = vmatprep.subr.bf16.mxu0 %v1827_v37  ;;  %1657 = vmatprep.subr.bf16.mxu1 %v1963_v42 }
 0x14d   :  { %1627 = vmatpush3.bf16.msra.mxu0 %v1828_v38  ;;  %1658 = vmatpush3.bf16.msra.mxu1 %v1837_v48 }
 0x14e   :  { %1628 = vmatprep.subr.bf16.mxu0 %v1829_v39  ;;  %1659 = vmatprep.subr.bf16.mxu1 %v1963_v42 }
 0x151   :  { %1629 = vmatpush3.bf16.msra.mxu0 %v1830_v40  ;;  %1660 = vmatpush3.bf16.msra.mxu1 %v1838_v49 }
 0x1d4   :  { %v950_v55 = vpop.f32.mrf.mxu0  ;;  %v993_v56 = vpop.f32.mrf.mxu1 }
 0x1d5   :  { %v994_v63 = vadd.f32 %v993_v56, %v950_v55 }
 0x1d6   :  { %v952_v57 = vpop.f32.mrf.mxu0  ;;  %v995_v58 = vpop.f32.mrf.mxu1 }
 0x1d7   :  { %v996_v5 = vadd.f32 %v995_v58, %v952_v57 }
 0x1d8   :  { %v954_v61 = vpop.f32.mrf.mxu0  ;;  %v997_v62 = vpop.f32.mrf.mxu1 }
 0x1d9   :  { %v998_v1 = vadd.f32 %v997_v62, %v954_v61 }
 0x1da   :  { %v956_v3 = vpop.f32.mrf.mxu0  ;;  %v999_v4 = vpop.f32.mrf.mxu1 }
 0x1db   :  { %v1084_v6 = vpack.c.bf16 %v998_v1, %v994_v63  ;;  %v1000_v7 = vadd.f32 %v999_v4, %v956_v3 }
 0x1dd   :  { %v1085_v8 = vpack.c.bf16 %v1000_v7, %v996_v5  ;;  %v1128_v9 = vadd.bf16 %v1113_v2, %v1084_v6 }
 0x1df   :  { %v1129_v10 = vadd.bf16 %v1120_v16, %v1085_v8  ;;  %v1131_v15 = vmax.bf16 %v1962_v0, %v1128_v9 }
 0x1e1   :  { %v1132_v11 = vmax.bf16 %v1962_v0, %v1129_v10 }
 0x1e3   :  { %1365 = vmatprep.mubr.bf16.mxu0 %v1132_v11 }
 0x1e4   :  { %1366 = vmatmul.mubr.bf16.vlgmr.msra.gmra.mxu0 %v1131_v15 }
 0x1f4   :  { %v1586_v18 = vpop.f32.mrf.mxu0  ;;  %v1608_v19 = vpop.f32.mrf.mxu1 }
 0x1f6   :  { %v1587_v21 = vpop.f32.mrf.mxu0  ;;  %v1609_v22 = vpop.f32.mrf.mxu1 }
 0x1f7   :  { %v1588_v25 = vadd.f32 %v1587_v21, %v1586_v18  ;;  %v1610_v26 = vadd.f32 %v1609_v22, %v1608_v19 }
 0x1f8   :  { %v1589_v23 = vpop.f32.mrf.mxu0  ;;  %v1611_v24 = vpop.f32.mrf.mxu1 }
 0x1f9   :  { %v1078_v32 = vadd.f32 %v1610_v26, %v1588_v25 }
 0x1fa   :  { %v1590_v28 = vpop.f32.mrf.mxu0  ;;  %v1612_v29 = vpop.f32.mrf.mxu1 }
 0x1fb   :  { %v1591_v30 = vadd.f32 %v1590_v28, %v1589_v23  ;;  %v1613_v31 = vadd.f32 %v1612_v29, %v1611_v24 }
 0x1fd   :  { %v1081_v33 = vadd.f32 %v1613_v31, %v1591_v30 }
 0x1ff   :  { %v1086_v12 = vpack.c.bf16 %v1081_v33, %v1078_v32 }
 0x201   :  { %v1130_v14 = vadd.bf16 %v1127_v34, %v1086_v12 }
 0x203   :  { %v1133_v35 = vmax.bf16 %v1962_v0, %v1130_v14 }
 0x205   :  { %1662 = vmatmul.mubr.bf16.vlgmr.msra.gmra.mxu1 %v1133_v35 }
 0x2a4   :  { %v1630_v36 = vpop.f32.mrf.mxu0 }
 0x2a6   :  { %v1631_v37 = vpop.f32.mrf.mxu0 }
 0x2a7   :  { %v1632_v39 = vadd.f32 %v1631_v37, %v1630_v36 }
 0x2a8   :  { %v1633_v38 = vpop.f32.mrf.mxu0 }
 0x2a9   :  { %v1368_v43 = vadd.f32 %v1632_v39, %v1536_v41 }
 0x2aa   :  { %v1634_v40 = vpop.f32.mrf.mxu0 }
 0x2ab   :  { %v1635_v42 = vadd.f32 %v1634_v40, %v1633_v38 }
 0x2ad   :  { %v1371_v13 = vadd.f32 %v1635_v42, %v1536_v41 }
 0x2c5   :  { %v1408_v44 = vpop.f32.mrf.mxu1 }
 0x2c6   :  { %v1409_v45 = vadd.f32 %v1408_v44, %v1368_v43 }
 0x2c7   :  { %v1663_v46 = vpop.f32.mrf.mxu1 }
 0x2c8   :  { %1839 = vtanh.f32 %v1409_v45 }
 0x2c9   :  { %v1411_v47 = vpop.f32.mrf.mxu1 }
 0x2ca   :  { %v1412_v48 = vadd.f32 %v1411_v47, %v1371_v13 }
 0x2cb   :  { %v1664_v0 = vpop.f32.mrf.mxu1 }
 0x2cc   :  { %1841 = vtanh.f32 %v1412_v48 }
 0x2d5   :  { %v1840_v49 = vpop.eup %1839 }
 0x2d9   :  { %v1842_v50 = vpop.eup %1841 }
 0x2da   :  { %v1568_v51 = vpack.c.bf16 %v1842_v50, %v1840_v49 }
 0x2dc   :  { %1569 = vst [vmem:[%s2078_s7] sm:$0xff] %v1568_v51  }
 0x2dd   :  { %1431 = vsyncpa [#allocation3], 1 }
 0x2de   :  { %1432 = vsyncpa [#allocation5], 1 }
 0x2df   :  { %1433 = vsyncpa [#allocation8], 1 }

</bundles_post_ra>
